<compile_context>
chip_gen: v5e
topology: v5e:2x2
jax: 0.10.0
libtpu: 0.0.40
codegen_flags: <defaults>
</compile_context>

<pallas_src>
import functools

import numpy as np
import jax
import jax.numpy as jnp
from jax.experimental import pallas as pl
from jax.experimental.pallas import tpu as pltpu


def spectral_kernel(x_ref, basis_ref, w1_ref, b1_ref, w2_ref, b2_ref, out_ref,
                    *, num_windows, fpad):
    # x_ref     : [BT, L]              raw signal tile (f32)
    # basis_ref : [L, NW*2*FPAD]       Hann * unfold * DFT, folded constant
    # w1_ref    : [FPAD, H]            rows pre-scaled by 1/NW, zero-padded
    # b1_ref    : [1, H]
    # w2_ref    : [H, OPAD]            zero-padded to 128 lanes
    # b2_ref    : [1, OPAD]
    # out_ref   : [BT, OPAD]
    bt = x_ref.shape[0]
    xv = x_ref[...].astype(basis_ref.dtype)            # no-op when basis is f32

    # unfold + Hann + rFFT of every window in one MXU matmul
    spec = jnp.dot(xv, basis_ref[...],
                   preferred_element_type=jnp.float32)  # [BT, NW*2*FPAD]

    # magnitude, summed over windows (mean's 1/NW is folded into w1)
    feat = jnp.zeros((bt, fpad), jnp.float32)
    for j in range(num_windows):                        # static unroll (NW small)
        base = 2 * j * fpad
        re = spec[:, base:base + fpad]                  # 128-lane aligned slices
        im = spec[:, base + fpad:base + 2 * fpad]
        feat = feat + jnp.sqrt(re * re + im * im)

    # spectral_fc: Linear -> ReLU -> Dropout(eval: identity) -> Linear -> ReLU
    h = jnp.dot(feat, w1_ref[...], preferred_element_type=jnp.float32) + b1_ref[...]
    h = jnp.maximum(h, 0.0)
    # TODO(synk): Dropout(0.3) is the identity in eval mode; no RNG mask applied.
    o = jnp.dot(h, w2_ref[...], preferred_element_type=jnp.float32) + b2_ref[...]
    out_ref[...] = jnp.maximum(o, 0.0)


def make_params(key, fft_size, hidden, out_features):
    k1, k2, k3, k4 = jax.random.split(key, 4)
    s1 = 1.0 / np.sqrt(fft_size)
    s2 = 1.0 / np.sqrt(hidden)
    w1 = jax.random.uniform(k1, (fft_size, hidden), jnp.float32, -s1, s1)
    b1 = jax.random.uniform(k2, (1, hidden), jnp.float32, -s1, s1)
    w2 = jax.random.uniform(k3, (hidden, out_features), jnp.float32, -s2, s2)
    b2 = jax.random.uniform(k4, (1, out_features), jnp.float32, -s2, s2)
    return w1, b1, w2, b2


def _round_up(x, m):
    return -(-x // m) * m


def spectral_branch_forward(x, params, *, signal_length, window_size, stride,
                            use_window=True, out_features=32,
                            batch_tile=8, compute_dtype=jnp.float32):
    w1, b1, w2, b2 = params
    xs = x[:, 0, :] if x.ndim > 2 else x                 # squeeze(1)
    B, L = xs.shape
    assert L == signal_length

    W = min(window_size, signal_length)
    S = min(stride, signal_length)
    F = W // 2 + 1                                       # rfft bins ('magnitude')
    # TODO(synk): non-windowed path (W >= signal_length) not implemented here.
    assert W < signal_length, "this wrapper implements the windowed (unfold) path"
    NW = (signal_length - W) // S + 1
    FPAD = _round_up(F, 128)                             # lane-aligned bin count
    H = w1.shape[1]
    O = w2.shape[1]
    OPAD = _round_up(O, 128)                             # lane-dense output

    # ---- constants built at trace time (numpy) -------------------------------
    n = np.arange(W)
    if use_window:
        hann = 0.5 * (1.0 - np.cos(2.0 * np.pi * n / W))  # torch.hann_window (periodic)
    else:
        hann = np.ones((W,))
    k = np.arange(F)
    ang = 2.0 * np.pi * np.outer(n, k) / W                # [W, F]
    cos_h = hann[:, None] * np.cos(ang)                   # Hann folded into basis
    sin_h = hann[:, None] * (-np.sin(ang))

    # unfold folded into the basis: window j reads rows [j*S, j*S+W)
    basis_np = np.zeros((L, NW * 2 * FPAD), np.float32)
    for j in range(NW):
        r0 = j * S
        c0 = 2 * j * FPAD
        basis_np[r0:r0 + W, c0:c0 + F] = cos_h
        basis_np[r0:r0 + W, c0 + FPAD:c0 + FPAD + F] = sin_h
    basis = jnp.asarray(basis_np, compute_dtype)

    # 1/NW mean folded into w1; pad w1 rows / w2 cols to lane-aligned sizes
    w1p = jnp.zeros((FPAD, H), jnp.float32).at[:F, :].set(w1 * (1.0 / NW))
    b1p = b1.reshape(1, H).astype(jnp.float32)
    w2p = jnp.zeros((H, OPAD), jnp.float32).at[:, :O].set(w2)
    b2p = jnp.zeros((1, OPAD), jnp.float32).at[:, :O].set(b2.reshape(1, O))

    # ---- batch tiling --------------------------------------------------------
    B_pad = _round_up(B, batch_tile)
    if B_pad != B:
        xs = jnp.pad(xs, ((0, B_pad - B), (0, 0)))
    grid = (B_pad // batch_tile,)
    const_map = lambda i: (0, 0)

    flops = int(2 * B_pad * L * (NW * 2 * FPAD)
                + 3 * B_pad * NW * FPAD
                + 2 * B_pad * FPAD * H
                + 2 * B_pad * H * OPAD)
    bytes_accessed = int(B_pad * L * 4
                         + basis.size * jnp.dtype(compute_dtype).itemsize
                         + (w1p.size + b1p.size + w2p.size + b2p.size) * 4
                         + B_pad * OPAD * 4)

    out = pl.pallas_call(
        functools.partial(spectral_kernel, num_windows=NW, fpad=FPAD),
        out_shape=jax.ShapeDtypeStruct((B_pad, OPAD), jnp.float32),
        grid_spec=pltpu.PrefetchScalarGridSpec(
            num_scalar_prefetch=0,
            grid=grid,
            in_specs=[
                pl.BlockSpec((batch_tile, L), lambda i: (i, 0)),
                pl.BlockSpec((L, NW * 2 * FPAD), const_map),
                pl.BlockSpec((FPAD, H), const_map),
                pl.BlockSpec((1, H), const_map),
                pl.BlockSpec((H, OPAD), const_map),
                pl.BlockSpec((1, OPAD), const_map),
            ],
            out_specs=pl.BlockSpec((batch_tile, OPAD), lambda i: (i, 0)),
        ),
        compiler_params=pltpu.CompilerParams(
            dimension_semantics=("parallel",)),
        cost_estimate=pl.CostEstimate(
            flops=flops,
            transcendentals=int(B_pad * NW * FPAD),
            bytes_accessed=bytes_accessed),
    )(xs, basis, w1p, b1p, w2p, b2p)

    return out[:B, :O]


def reference_forward(x, params, *, signal_length, window_size, stride,
                      use_window=True):
    """Pure-JAX reference (mirrors the PyTorch forward, eval mode)."""
    w1, b1, w2, b2 = params
    xs = x[:, 0, :]
    W = min(window_size, signal_length)
    S = min(stride, signal_length)
    NW = (signal_length - W) // S + 1
    idx = jnp.arange(NW)[:, None] * S + jnp.arange(W)[None, :]
    windows = xs[:, idx]
    if use_window:
        n = jnp.arange(W)
        windows = windows * (0.5 * (1.0 - jnp.cos(2.0 * jnp.pi * n / W)))
    mag = jnp.abs(jnp.fft.rfft(windows, axis=-1))
    feat = jnp.mean(mag, axis=1)
    h = jnp.maximum(feat @ w1 + b1, 0.0)
    return jnp.maximum(h @ w2 + b2, 0.0)


if __name__ == "__main__":
    # Small, consistent shapes: batch=2, channels=1, signal_length=256,
    # window_size=64, stride=32 -> 7 windows, fft_size=33, hidden=128, out=32.
    signal_length = 256
    window_size = 64
    stride = 32
    out_features = 32
    hidden = 128
    fft_size = window_size // 2 + 1

    key = jax.random.PRNGKey(0)
    kx, kp = jax.random.split(key)
    x = jax.random.normal(kx, (2, 1, signal_length), dtype=jnp.float32)
    params = make_params(kp, fft_size, hidden, out_features)

    out = spectral_branch_forward(
        x, params,
        signal_length=signal_length, window_size=window_size, stride=stride,
        use_window=True, out_features=out_features,
        batch_tile=8, compute_dtype=jnp.float32)
    out = jax.block_until_ready(out)

    ref = reference_forward(
        x, params,
        signal_length=signal_length, window_size=window_size, stride=stride,
        use_window=True)
    np.testing.assert_allclose(np.asarray(out), np.asarray(ref),
                               rtol=1e-3, atol=1e-3)

    print("KERNEL_OK")
</pallas_src>

<mosaic_0001>
module attributes {stable_mosaic.version = 11 : i64} {
  func.func @spectral_kernel(%arg0: i32, %arg1: memref<8x256xf32, #tpu.memory_space<vmem>>, %arg2: memref<256x1792xf32, #tpu.memory_space<vmem>>, %arg3: memref<128x128xf32, #tpu.memory_space<vmem>>, %arg4: memref<1x128xf32, #tpu.memory_space<vmem>>, %arg5: memref<128x128xf32, #tpu.memory_space<vmem>>, %arg6: memref<1x128xf32, #tpu.memory_space<vmem>>, %arg7: memref<8x128xf32, #tpu.memory_space<vmem>>) attributes {dimension_semantics = [#tpu.dimension_semantics<parallel>], iteration_bounds = array<i64: 1>, scalar_prefetch = 0 : i64, scratch_operands = 0 : i64, tpu.core_type = #tpu.core_type<tc>, window_params = [{transform_indices = @transform_0, window_bounds = array<i64: 8, 256>}, {pipeline_mode = #tpu.pipeline_mode<synchronous>, transform_indices = @transform_1, window_bounds = array<i64: 256, 1792>}, {pipeline_mode = #tpu.pipeline_mode<synchronous>, transform_indices = @transform_2, window_bounds = array<i64: 128, 128>}, {pipeline_mode = #tpu.pipeline_mode<synchronous>, transform_indices = @transform_3, window_bounds = array<i64: 1, 128>}, {pipeline_mode = #tpu.pipeline_mode<synchronous>, transform_indices = @transform_4, window_bounds = array<i64: 128, 128>}, {pipeline_mode = #tpu.pipeline_mode<synchronous>, transform_indices = @transform_5, window_bounds = array<i64: 1, 128>}, {transform_indices = @transform_6, window_bounds = array<i64: 8, 128>}]} {
    %c0 = arith.constant 0 : index
    %c0_0 = arith.constant 0 : index
    %0 = vector.load %arg1[%c0, %c0_0] : memref<8x256xf32, #tpu.memory_space<vmem>>, vector<8x256xf32>
    %c0_1 = arith.constant 0 : index
    %c0_2 = arith.constant 0 : index
    %1 = vector.load %arg2[%c0_1, %c0_2] : memref<256x1792xf32, #tpu.memory_space<vmem>>, vector<256x1792xf32>
    %cst = arith.constant dense<0.000000e+00> : vector<8x1792xf32>
    %2 = tpu.matmul %0, %1, %cst {dimension_numbers = #tpu.dot_dimension_numbers<[1], [0], [0], [1], [0, 0, 1, 1], [], []>} : vector<8x256xf32>, vector<256x1792xf32>, vector<8x1792xf32> -> vector<8x1792xf32>
    %cst_3 = arith.constant 0.000000e+00 : f32
    %3 = vector.broadcast %cst_3 : f32 to vector<8x128xf32>
    %4 = vector.extract_strided_slice %2 {offsets = [0, 0], sizes = [8, 128], strides = [1, 1]} : vector<8x1792xf32> to vector<8x128xf32>
    %5 = vector.extract_strided_slice %2 {offsets = [0, 128], sizes = [8, 128], strides = [1, 1]} : vector<8x1792xf32> to vector<8x128xf32>
    %6 = arith.mulf %4, %4 : vector<8x128xf32>
    %7 = arith.mulf %5, %5 : vector<8x128xf32>
    %8 = arith.addf %6, %7 : vector<8x128xf32>
    %9 = math.sqrt %8 : vector<8x128xf32>
    %10 = arith.addf %3, %9 : vector<8x128xf32>
    %11 = vector.extract_strided_slice %2 {offsets = [0, 256], sizes = [8, 128], strides = [1, 1]} : vector<8x1792xf32> to vector<8x128xf32>
    %12 = vector.extract_strided_slice %2 {offsets = [0, 384], sizes = [8, 128], strides = [1, 1]} : vector<8x1792xf32> to vector<8x128xf32>
    %13 = arith.mulf %11, %11 : vector<8x128xf32>
    %14 = arith.mulf %12, %12 : vector<8x128xf32>
    %15 = arith.addf %13, %14 : vector<8x128xf32>
    %16 = math.sqrt %15 : vector<8x128xf32>
    %17 = arith.addf %10, %16 : vector<8x128xf32>
    %18 = vector.extract_strided_slice %2 {offsets = [0, 512], sizes = [8, 128], strides = [1, 1]} : vector<8x1792xf32> to vector<8x128xf32>
    %19 = vector.extract_strided_slice %2 {offsets = [0, 640], sizes = [8, 128], strides = [1, 1]} : vector<8x1792xf32> to vector<8x128xf32>
    %20 = arith.mulf %18, %18 : vector<8x128xf32>
    %21 = arith.mulf %19, %19 : vector<8x128xf32>
    %22 = arith.addf %20, %21 : vector<8x128xf32>
    %23 = math.sqrt %22 : vector<8x128xf32>
    %24 = arith.addf %17, %23 : vector<8x128xf32>
    %25 = vector.extract_strided_slice %2 {offsets = [0, 768], sizes = [8, 128], strides = [1, 1]} : vector<8x1792xf32> to vector<8x128xf32>
    %26 = vector.extract_strided_slice %2 {offsets = [0, 896], sizes = [8, 128], strides = [1, 1]} : vector<8x1792xf32> to vector<8x128xf32>
    %27 = arith.mulf %25, %25 : vector<8x128xf32>
    %28 = arith.mulf %26, %26 : vector<8x128xf32>
    %29 = arith.addf %27, %28 : vector<8x128xf32>
    %30 = math.sqrt %29 : vector<8x128xf32>
    %31 = arith.addf %24, %30 : vector<8x128xf32>
    %32 = vector.extract_strided_slice %2 {offsets = [0, 1024], sizes = [8, 128], strides = [1, 1]} : vector<8x1792xf32> to vector<8x128xf32>
    %33 = vector.extract_strided_slice %2 {offsets = [0, 1152], sizes = [8, 128], strides = [1, 1]} : vector<8x1792xf32> to vector<8x128xf32>
    %34 = arith.mulf %32, %32 : vector<8x128xf32>
    %35 = arith.mulf %33, %33 : vector<8x128xf32>
    %36 = arith.addf %34, %35 : vector<8x128xf32>
    %37 = math.sqrt %36 : vector<8x128xf32>
    %38 = arith.addf %31, %37 : vector<8x128xf32>
    %39 = vector.extract_strided_slice %2 {offsets = [0, 1280], sizes = [8, 128], strides = [1, 1]} : vector<8x1792xf32> to vector<8x128xf32>
    %40 = vector.extract_strided_slice %2 {offsets = [0, 1408], sizes = [8, 128], strides = [1, 1]} : vector<8x1792xf32> to vector<8x128xf32>
    %41 = arith.mulf %39, %39 : vector<8x128xf32>
    %42 = arith.mulf %40, %40 : vector<8x128xf32>
    %43 = arith.addf %41, %42 : vector<8x128xf32>
    %44 = math.sqrt %43 : vector<8x128xf32>
    %45 = arith.addf %38, %44 : vector<8x128xf32>
    %46 = vector.extract_strided_slice %2 {offsets = [0, 1536], sizes = [8, 128], strides = [1, 1]} : vector<8x1792xf32> to vector<8x128xf32>
    %47 = vector.extract_strided_slice %2 {offsets = [0, 1664], sizes = [8, 128], strides = [1, 1]} : vector<8x1792xf32> to vector<8x128xf32>
    %48 = arith.mulf %46, %46 : vector<8x128xf32>
    %49 = arith.mulf %47, %47 : vector<8x128xf32>
    %50 = arith.addf %48, %49 : vector<8x128xf32>
    %51 = math.sqrt %50 : vector<8x128xf32>
    %52 = arith.addf %45, %51 : vector<8x128xf32>
    %c0_4 = arith.constant 0 : index
    %c0_5 = arith.constant 0 : index
    %53 = vector.load %arg3[%c0_4, %c0_5] : memref<128x128xf32, #tpu.memory_space<vmem>>, vector<128x128xf32>
    %cst_6 = arith.constant dense<0.000000e+00> : vector<8x128xf32>
    %54 = tpu.matmul %52, %53, %cst_6 {dimension_numbers = #tpu.dot_dimension_numbers<[1], [0], [0], [1], [0, 0, 1, 1], [], []>} : vector<8x128xf32>, vector<128x128xf32>, vector<8x128xf32> -> vector<8x128xf32>
    %c0_7 = arith.constant 0 : index
    %c0_8 = arith.constant 0 : index
    %55 = vector.load %arg4[%c0_7, %c0_8] : memref<1x128xf32, #tpu.memory_space<vmem>>, vector<1x128xf32>
    %56 = vector.broadcast %55 : vector<1x128xf32> to vector<8x128xf32>
    %57 = arith.addf %54, %56 : vector<8x128xf32>
    %cst_9 = arith.constant 0.000000e+00 : f32
    %58 = vector.broadcast %cst_9 : f32 to vector<8x128xf32>
    %59 = arith.maximumf %57, %58 : vector<8x128xf32>
    %c0_10 = arith.constant 0 : index
    %c0_11 = arith.constant 0 : index
    %60 = vector.load %arg5[%c0_10, %c0_11] : memref<128x128xf32, #tpu.memory_space<vmem>>, vector<128x128xf32>
    %cst_12 = arith.constant dense<0.000000e+00> : vector<8x128xf32>
    %61 = tpu.matmul %59, %60, %cst_12 {dimension_numbers = #tpu.dot_dimension_numbers<[1], [0], [0], [1], [0, 0, 1, 1], [], []>} : vector<8x128xf32>, vector<128x128xf32>, vector<8x128xf32> -> vector<8x128xf32>
    %c0_13 = arith.constant 0 : index
    %c0_14 = arith.constant 0 : index
    %62 = vector.load %arg6[%c0_13, %c0_14] : memref<1x128xf32, #tpu.memory_space<vmem>>, vector<1x128xf32>
    %63 = vector.broadcast %62 : vector<1x128xf32> to vector<8x128xf32>
    %64 = arith.addf %61, %63 : vector<8x128xf32>
    %cst_15 = arith.constant 0.000000e+00 : f32
    %65 = vector.broadcast %cst_15 : f32 to vector<8x128xf32>
    %66 = arith.maximumf %64, %65 : vector<8x128xf32>
    %c0_16 = arith.constant 0 : index
    %c0_17 = arith.constant 0 : index
    %67 = vector.load %arg7[%c0_16, %c0_17] : memref<8x128xf32, #tpu.memory_space<vmem>>, vector<8x128xf32>
    tpu.vector_store %arg7[%c0_16, %c0_17], %66 {strides = array<i32>} : memref<8x128xf32, #tpu.memory_space<vmem>>, vector<8x128xf32>,
    return
  }
  func.func @transform_0(%arg0: i32) -> (i32, i32) {
    %c0_i32 = arith.constant 0 : i32
    %c0_i32_0 = arith.constant 0 : i32
    return %arg0, %c0_i32 : i32, i32
  }
  func.func @transform_1(%arg0: i32) -> (i32, i32) {
    %c0_i32 = arith.constant 0 : i32
    %c0_i32_0 = arith.constant 0 : i32
    %c0_i32_1 = arith.constant 0 : i32
    return %c0_i32, %c0_i32_0 : i32, i32
  }
  func.func @transform_2(%arg0: i32) -> (i32, i32) {
    %c0_i32 = arith.constant 0 : i32
    %c0_i32_0 = arith.constant 0 : i32
    %c0_i32_1 = arith.constant 0 : i32
    return %c0_i32, %c0_i32_0 : i32, i32
  }
  func.func @transform_3(%arg0: i32) -> (i32, i32) {
    %c0_i32 = arith.constant 0 : i32
    %c0_i32_0 = arith.constant 0 : i32
    %c0_i32_1 = arith.constant 0 : i32
    return %c0_i32, %c0_i32_0 : i32, i32
  }
  func.func @transform_4(%arg0: i32) -> (i32, i32) {
    %c0_i32 = arith.constant 0 : i32
    %c0_i32_0 = arith.constant 0 : i32
    %c0_i32_1 = arith.constant 0 : i32
    return %c0_i32, %c0_i32_0 : i32, i32
  }
  func.func @transform_5(%arg0: i32) -> (i32, i32) {
    %c0_i32 = arith.constant 0 : i32
    %c0_i32_0 = arith.constant 0 : i32
    %c0_i32_1 = arith.constant 0 : i32
    return %c0_i32, %c0_i32_0 : i32, i32
  }
  func.func @transform_6(%arg0: i32) -> (i32, i32) {
    %c0_i32 = arith.constant 0 : i32
    %c0_i32_0 = arith.constant 0 : i32
    return %arg0, %c0_i32 : i32, i32
  }
}

</mosaic_0001>

<bundles_post_ra>
// kernel: tpu_custom_call.1
= control target key start
LH: loop header
LB: loop body
LE: loop exit
PB: predicated region body
PF: predicated region fallthrough
CT: control target
= control target key end

     0   :  { %11 = vsyncpa [#allocation3], 0  ;;  %s1717_s0 = inlined_call_operand.hbm [shape: f32[8,256], index: 0, kind: input, shape index: {}]   ;;  %s1718_s1 = inlined_call_operand.hbm [shape: f32[256,1792], index: 1, kind: input, shape index: {}]   ;;  %s1719_s2 = inlined_call_operand.hbm [shape: f32[128,128], index: 2, kind: input, shape index: {}]   ;;  %s1720_s3 = inlined_call_operand.hbm [shape: f32[1,128], index: 3, kind: input, shape index: {}]   ;;  %s1721_s4 = inlined_call_operand.hbm [shape: f32[128,128], index: 4, kind: input, shape index: {}]   ;;  %s1722_s5 = inlined_call_operand.hbm [shape: f32[1,128], index: 5, kind: input, shape index: {}]   ;;  %s1723_s6 = inlined_call_operand.hbm [shape: f32[8,128], index: 6, kind: output, shape index: {}]  }
   0x1   :  { %12 = vsyncpa [#allocation6], 0 }
   0x2   :  { %13 = vsyncpa [#allocation9], 0 }
   0x3   :  { %14 = vsyncpa [#allocation12], 0  ;;  %s31_s23 = sshll.u32 %s1718_s1, 4  ;;  %s32_s23 = int_to_ptr.hbm [resolvable:$true] %s31_s23 }
   0x4   :  { %15 = vsyncpa [#allocation4], 0  ;;  %s1544_s24 = smov [#allocation5]   ;;  %s58_s28 = sshll.u32 %s1720_s3, 4  ;;  %s59_s28 = int_to_ptr.hbm [resolvable:$true] %s58_s28 }
   0x5   :  { %s33_s25 = sshll.u32 %s1544_s24, 4  ;;  %s1545_s29 = smov 1792   ;;  %s34_s25 = int_to_ptr.vmem [resolvable:$true] %s33_s25 }
   0x6   :  { %s1546_s30 = smov 112   ;;  %s1547_s7 = smov [#allocation8]  }
   0x7   :  { %39 = dma.hbm_to_vmem [thread:$0]  %s32_s23, 57344, %s34_s25, [#allocation6], %s1545_s29, %s1545_s29, %s1546_s30  }
   0x8   :  { %s60_s8 = sshll.u32 %s1547_s7, 4  ;;  %s21_s11 = sshll.u32 %s1717_s0, 4  ;;  %s61_s8 = int_to_ptr.vmem [resolvable:$true] %s60_s8  ;;  %s22_s11 = int_to_ptr.hbm [resolvable:$true] %s21_s11 }
   0x9   :  { %63 = dma.hbm_to_vmem [thread:$0]  %s59_s28, 16, %s61_s8, [#allocation9]  }
   0xa   :  { %s44_s13 = sshll.u32 %s1719_s2, 4  ;;  %s1548_s14 = smov [#allocation2]   ;;  %s45_s13 = int_to_ptr.hbm [resolvable:$true] %s44_s13 }
   0xb   :  { %s23_s15 = sshll.u32 %s1548_s14, 4  ;;  %s1549_s3 = smov [#allocation7]   ;;  %s24_s15 = int_to_ptr.vmem [resolvable:$true] %s23_s15 }
   0xc   :  { %26 = dma.hbm_to_vmem [thread:$0]  %s22_s11, 256, %s24_s15, [#allocation3]  }
   0xd   :  { %s46_s16 = sshll.u32 %s1549_s3, 4  ;;  %s1550_s17 = smov 128   ;;  %s47_s16 = int_to_ptr.vmem [resolvable:$true] %s46_s16 }
   0xe   :  { %s1551_s18 = smov 8   ;;  %s68_s20 = sshll.u32 %s1721_s4, 4  ;;  %s69_s20 = int_to_ptr.hbm [resolvable:$true] %s68_s20 }
   0xf   :  { %52 = dma.hbm_to_vmem [thread:$0]  %s45_s13, 2048, %s47_s16, [#allocation6], %s1550_s17, %s1550_s17, %s1551_s18  }
  0x10   :  { %s1552_s21 = smov [#allocation10]   ;;  %s82_s24 = sshll.u32 %s1722_s5, 4  ;;  %s83_s24 = int_to_ptr.hbm [resolvable:$true] %s82_s24 }
  0x11   :  { %s70_s22 = sshll.u32 %s1552_s21, 4  ;;  %s1553_s25 = smov [#allocation11]   ;;  %s71_s22 = int_to_ptr.vmem [resolvable:$true] %s70_s22 }
  0x12   :  { %76 = dma.hbm_to_vmem [thread:$0]  %s69_s20, 2048, %s71_s22, [#allocation9], %s1550_s17, %s1550_s17, %s1551_s18  }
  0x13   :  { %s84_s26 = sshll.u32 %s1553_s25, 4  ;;  %s85_s26 = int_to_ptr.vmem [resolvable:$true] %s84_s26 }
  0x14   :  { %87 = dma.hbm_to_vmem [thread:$0]  %s83_s24, 16, %s85_s26, [#allocation12]  }
  0x15   :  { %1534 = dma.done.wait [#allocation3], 256  }
  0x16   :  { %1535 = vsyncadd [#allocation3], 4294967040 }
  0x17   :  { %1536 = dma.done.wait [#allocation6], 59392  }
  0x18   :  { %1537 = vsyncadd [#allocation6], 4294907904 }
  0x19   :  { %1538 = dma.done.wait [#allocation9], 2064  }
  0x1a   :  { %1539 = vsyncadd [#allocation9], 4294965232 }
  0x1b   :  { %1540 = dma.done.wait [#allocation12], 16  }
  0x1c   :  { %1541 = vsyncadd [#allocation12], 4294967280  ;;  %v325_v0 = vld [vmem:[#allocation5 + $0x698] sm:$0xff]  ;;  %v311_v2 = vld [vmem:[#allocation5 + $0x628] sm:$0xff]  ;;  %s1554_s4 = smov [#allocation13]   ;;  %s1324_s29 = sshll.u32 %s1723_s6, 4  ;;  %s1325_s29 = int_to_ptr.hbm [resolvable:$true] %s1324_s29 }
  0x1d   :  { %v549_v1 = vld [vmem:[#allocation5 + $0xd98] sm:$0xff]  ;;  %602 = vmatpush.msra.mxu2 %v325_v0  ;;  %v535_v3 = vld [vmem:[#allocation5 + $0xd28] sm:$0xff]  ;;  %v324_v6 = vld [vmem:[#allocation5 + $0x690] sm:$0xff]  ;;  %s1322_s5 = sshll.u32 %s1554_s4, 4  ;;  %s1323_s5 = int_to_ptr.vmem [resolvable:$true] %s1322_s5 }
  0x1e   :  { %622 = vmatpush.msra.mxu3 %v549_v1  ;;  %v297_v4 = vld [vmem:[#allocation5 + $0x5b8] sm:$0xff]  ;;  %v548_v7 = vld [vmem:[#allocation5 + $0xd90] sm:$0xff]  ;;  %v310_v8 = vld [vmem:[#allocation5 + $0x620] sm:$0xff]  ;;  %562 = vmatpush.msra.mxu0 %v324_v6 }
  0x1f   :  { %v521_v5 = vld [vmem:[#allocation5 + $0xcb8] sm:$0xff]  ;;  %603 = vmatpush.msra.mxu2 %v311_v2  ;;  %v534_v9 = vld [vmem:[#allocation5 + $0xd20] sm:$0xff]  ;;  %582 = vmatpush.msra.mxu1 %v548_v7  ;;  %v283_v10 = vld [vmem:[#allocation5 + $0x548] sm:$0xff] }
  0x20   :  { %623 = vmatpush.msra.mxu3 %v535_v3  ;;  %v507_v11 = vld [vmem:[#allocation5 + $0xc48] sm:$0xff]  ;;  %v296_v12 = vld [vmem:[#allocation5 + $0x5b0] sm:$0xff]  ;;  %563 = vmatpush.msra.mxu0 %v310_v8  ;;  %v269_v14 = vld [vmem:[#allocation5 + $0x4d8] sm:$0xff] }
  0x21   :  { %604 = vmatpush.msra.mxu2 %v297_v4  ;;  %v520_v13 = vld [vmem:[#allocation5 + $0xcb0] sm:$0xff]  ;;  %583 = vmatpush.msra.mxu1 %v534_v9  ;;  %v493_v15 = vld [vmem:[#allocation5 + $0xbd8] sm:$0xff]  ;;  %v282_v16 = vld [vmem:[#allocation5 + $0x540] sm:$0xff] }
  0x22   :  { %624 = vmatpush.msra.mxu3 %v521_v5  ;;  %v506_v17 = vld [vmem:[#allocation5 + $0xc40] sm:$0xff]  ;;  %564 = vmatpush.msra.mxu0 %v296_v12  ;;  %v255_v18 = vld [vmem:[#allocation5 + $0x468] sm:$0xff]  ;;  %v268_v20 = vld [vmem:[#allocation5 + $0x4d0] sm:$0xff] }
  0x23   :  { %605 = vmatpush.msra.mxu2 %v283_v10  ;;  %584 = vmatpush.msra.mxu1 %v520_v13  ;;  %v479_v19 = vld [vmem:[#allocation5 + $0xb68] sm:$0xff]  ;;  %v492_v21 = vld [vmem:[#allocation5 + $0xbd0] sm:$0xff]  ;;  %v241_v22 = vld [vmem:[#allocation5 + $0x3f8] sm:$0xff] }
  0x24   :  { %625 = vmatpush.msra.mxu3 %v507_v11  ;;  %565 = vmatpush.msra.mxu0 %v282_v16  ;;  %v465_v23 = vld [vmem:[#allocation5 + $0xaf8] sm:$0xff]  ;;  %v254_v24 = vld [vmem:[#allocation5 + $0x460] sm:$0xff]  ;;  %v227_v26 = vld [vmem:[#allocation5 + $0x388] sm:$0xff] }
  0x25   :  { %606 = vmatpush.msra.mxu2 %v269_v14  ;;  %585 = vmatpush.msra.mxu1 %v506_v17  ;;  %v478_v25 = vld [vmem:[#allocation5 + $0xb60] sm:$0xff]  ;;  %v451_v27 = vld [vmem:[#allocation5 + $0xa88] sm:$0xff]  ;;  %v240_v28 = vld [vmem:[#allocation5 + $0x3f0] sm:$0xff] }
  0x26   :  { %626 = vmatpush.msra.mxu3 %v493_v15  ;;  %566 = vmatpush.msra.mxu0 %v268_v20  ;;  %v464_v29 = vld [vmem:[#allocation5 + $0xaf0] sm:$0xff]  ;;  %v213_v30 = vld [vmem:[#allocation5 + $0x318] sm:$0xff]  ;;  %v226_v32 = vld [vmem:[#allocation5 + $0x380] sm:$0xff] }
  0x27   :  { %607 = vmatpush.msra.mxu2 %v255_v18  ;;  %586 = vmatpush.msra.mxu1 %v492_v21  ;;  %v437_v31 = vld [vmem:[#allocation5 + $0xa18] sm:$0xff]  ;;  %v450_v33 = vld [vmem:[#allocation5 + $0xa80] sm:$0xff]  ;;  %v199_v34 = vld [vmem:[#allocation5 + $0x2a8] sm:$0xff] }
  0x28   :  { %627 = vmatpush.msra.mxu3 %v479_v19  ;;  %567 = vmatpush.msra.mxu0 %v254_v24  ;;  %v423_v35 = vld [vmem:[#allocation5 + $0x9a8] sm:$0xff]  ;;  %v212_v36 = vld [vmem:[#allocation5 + $0x310] sm:$0xff]  ;;  %v185_v38 = vld [vmem:[#allocation5 + $0x238] sm:$0xff] }
  0x29   :  { %608 = vmatpush.msra.mxu2 %v241_v22  ;;  %587 = vmatpush.msra.mxu1 %v478_v25  ;;  %v436_v37 = vld [vmem:[#allocation5 + $0xa10] sm:$0xff]  ;;  %v409_v39 = vld [vmem:[#allocation5 + $0x938] sm:$0xff]  ;;  %v198_v40 = vld [vmem:[#allocation5 + $0x2a0] sm:$0xff] }
  0x2a   :  { %628 = vmatpush.msra.mxu3 %v465_v23  ;;  %568 = vmatpush.msra.mxu0 %v240_v28  ;;  %v422_v41 = vld [vmem:[#allocation5 + $0x9a0] sm:$0xff]  ;;  %v171_v42 = vld [vmem:[#allocation5 + $0x1c8] sm:$0xff]  ;;  %v184_v44 = vld [vmem:[#allocation5 + $0x230] sm:$0xff] }
  0x2b   :  { %609 = vmatpush.msra.mxu2 %v227_v26  ;;  %588 = vmatpush.msra.mxu1 %v464_v29  ;;  %v395_v43 = vld [vmem:[#allocation5 + $0x8c8] sm:$0xff]  ;;  %v408_v45 = vld [vmem:[#allocation5 + $0x930] sm:$0xff]  ;;  %v157_v46 = vld [vmem:[#allocation5 + $0x158] sm:$0xff] }
  0x2c   :  { %629 = vmatpush.msra.mxu3 %v451_v27  ;;  %569 = vmatpush.msra.mxu0 %v226_v32  ;;  %v381_v47 = vld [vmem:[#allocation5 + $0x858] sm:$0xff]  ;;  %v170_v48 = vld [vmem:[#allocation5 + $0x1c0] sm:$0xff]  ;;  %v143_v50 = vld [vmem:[#allocation5 + $0xe8] sm:$0xff] }
  0x2d   :  { %610 = vmatpush.msra.mxu2 %v213_v30  ;;  %589 = vmatpush.msra.mxu1 %v450_v33  ;;  %v394_v49 = vld [vmem:[#allocation5 + $0x8c0] sm:$0xff]  ;;  %v367_v51 = vld [vmem:[#allocation5 + $0x7e8] sm:$0xff]  ;;  %v156_v52 = vld [vmem:[#allocation5 + $0x150] sm:$0xff] }
  0x2e   :  { %630 = vmatpush.msra.mxu3 %v437_v31  ;;  %570 = vmatpush.msra.mxu0 %v212_v36  ;;  %v380_v53 = vld [vmem:[#allocation5 + $0x850] sm:$0xff]  ;;  %v129_v54 = vld [vmem:[#allocation5 + $0x78] sm:$0xff]  ;;  %v142_v56 = vld [vmem:[#allocation5 + $0xe0] sm:$0xff] }
  0x2f   :  { %611 = vmatpush.msra.mxu2 %v199_v34  ;;  %590 = vmatpush.msra.mxu1 %v436_v37  ;;  %v353_v55 = vld [vmem:[#allocation5 + $0x778] sm:$0xff]  ;;  %v366_v57 = vld [vmem:[#allocation5 + $0x7e0] sm:$0xff]  ;;  %v115_v58 = vld [vmem:[#allocation5 + $0x8] sm:$0xff] }
  0x30   :  { %631 = vmatpush.msra.mxu3 %v423_v35  ;;  %571 = vmatpush.msra.mxu0 %v198_v40  ;;  %v339_v59 = vld [vmem:[#allocation5 + $0x708] sm:$0xff]  ;;  %v128_v62 = vld [vmem:[#allocation5 + $0x70] sm:$0xff]  ;;  %v313_v0 = vld [vmem:[#allocation5 + $0x638] sm:$0xff] }
  0x31   :  { %612 = vmatpush.msra.mxu2 %v185_v38  ;;  %591 = vmatpush.msra.mxu1 %v422_v41  ;;  %v327_v60 = vld [vmem:[#allocation5 + $0x6a8] sm:$0xff]  ;;  %v352_v63 = vld [vmem:[#allocation5 + $0x770] sm:$0xff]  ;;  %v537_v1 = vld [vmem:[#allocation5 + $0xd38] sm:$0xff] }
  0x32   :  { %632 = vmatpush.msra.mxu3 %v409_v39  ;;  %572 = vmatpush.msra.mxu0 %v184_v44  ;;  %v551_v61 = vld [vmem:[#allocation5 + $0xda8] sm:$0xff]  ;;  %v114_v2 = vld [vmem:[#allocation5] sm:$0xff]  ;;  %v285_v8 = vld [vmem:[#allocation5 + $0x558] sm:$0xff] }
  0x33   :  { %613 = vmatpush.msra.mxu2 %v171_v42  ;;  %592 = vmatpush.msra.mxu1 %v408_v45  ;;  %v338_v3 = vld [vmem:[#allocation5 + $0x700] sm:$0xff]  ;;  %v299_v4 = vld [vmem:[#allocation5 + $0x5c8] sm:$0xff]  ;;  %v509_v9 = vld [vmem:[#allocation5 + $0xc58] sm:$0xff] }
  0x34   :  { %633 = vmatpush.msra.mxu3 %v395_v43  ;;  %573 = vmatpush.msra.mxu0 %v170_v48  ;;  %v523_v5 = vld [vmem:[#allocation5 + $0xcc8] sm:$0xff]  ;;  %v326_v6 = vld [vmem:[#allocation5 + $0x6a0] sm:$0xff]  ;;  %v312_v10 = vld [vmem:[#allocation5 + $0x630] sm:$0xff] }
  0x35   :  { %614 = vmatpush.msra.mxu2 %v157_v46  ;;  %593 = vmatpush.msra.mxu1 %v394_v49  ;;  %v550_v7 = vld [vmem:[#allocation5 + $0xda0] sm:$0xff]  ;;  %v536_v11 = vld [vmem:[#allocation5 + $0xd30] sm:$0xff]  ;;  %v271_v12 = vld [vmem:[#allocation5 + $0x4e8] sm:$0xff] }
  0x36   :  { %634 = vmatpush.msra.mxu3 %v381_v47  ;;  %574 = vmatpush.msra.mxu0 %v156_v52  ;;  %v495_v13 = vld [vmem:[#allocation5 + $0xbe8] sm:$0xff]  ;;  %v298_v14 = vld [vmem:[#allocation5 + $0x5c0] sm:$0xff]  ;;  %v257_v16 = vld [vmem:[#allocation5 + $0x478] sm:$0xff] }
  0x37   :  { %615 = vmatpush.msra.mxu2 %v143_v50  ;;  %594 = vmatpush.msra.mxu1 %v380_v53  ;;  %v522_v15 = vld [vmem:[#allocation5 + $0xcc0] sm:$0xff]  ;;  %v481_v17 = vld [vmem:[#allocation5 + $0xb78] sm:$0xff]  ;;  %v1608_v18 = vld [vmem:[#allocation2] sm:$0xff] }
  0x38   :  { %635 = vmatpush.msra.mxu3 %v367_v51  ;;  %575 = vmatpush.msra.mxu0 %v142_v56  ;;  %v1610_v19 = vld [vmem:[#allocation2 + $0x8] sm:$0xff]  ;;  %v284_v20 = vld [vmem:[#allocation5 + $0x550] sm:$0xff]  ;;  %v243_v22 = vld [vmem:[#allocation5 + $0x408] sm:$0xff] }
  0x39   :  { %616 = vmatpush.msra.mxu2 %v129_v54  ;;  %595 = vmatpush.msra.mxu1 %v366_v57  ;;  %v508_v21 = vld [vmem:[#allocation5 + $0xc50] sm:$0xff]  ;;  %v467_v23 = vld [vmem:[#allocation5 + $0xb08] sm:$0xff]  ;;  %v270_v24 = vld [vmem:[#allocation5 + $0x4e0] sm:$0xff] }
  0x3a   :  { %636 = vmatpush.msra.mxu3 %v353_v55  ;;  %576 = vmatpush.msra.mxu0 %v128_v62  ;;  %v494_v25 = vld [vmem:[#allocation5 + $0xbe0] sm:$0xff]  ;;  %v229_v26 = vld [vmem:[#allocation5 + $0x398] sm:$0xff]  ;;  %v256_v28 = vld [vmem:[#allocation5 + $0x470] sm:$0xff] }
  0x3b   :  { %617 = vmatpush.msra.mxu2 %v115_v58  ;;  %596 = vmatpush.msra.mxu1 %v352_v63  ;;  %v453_v27 = vld [vmem:[#allocation5 + $0xa98] sm:$0xff]  ;;  %v480_v29 = vld [vmem:[#allocation5 + $0xb70] sm:$0xff]  ;;  %v215_v30 = vld [vmem:[#allocation5 + $0x328] sm:$0xff] }
  0x3c   :  { %637 = vmatpush.msra.mxu3 %v339_v59  ;;  %577 = vmatpush.msra.mxu0 %v114_v2  ;;  %v439_v31 = vld [vmem:[#allocation5 + $0xa28] sm:$0xff]  ;;  %v242_v32 = vld [vmem:[#allocation5 + $0x400] sm:$0xff]  ;;  %v201_v34 = vld [vmem:[#allocation5 + $0x2b8] sm:$0xff] }
  0x3d   :  { %682 = vmatpush.msrb.mxu2 %v327_v60  ;;  %597 = vmatpush.msra.mxu1 %v338_v3  ;;  %v466_v33 = vld [vmem:[#allocation5 + $0xb00] sm:$0xff]  ;;  %v425_v35 = vld [vmem:[#allocation5 + $0x9b8] sm:$0xff]  ;;  %v228_v36 = vld [vmem:[#allocation5 + $0x390] sm:$0xff] }
  0x3e   :  { %702 = vmatpush.msrb.mxu3 %v551_v61  ;;  %642 = vmatpush.msrb.mxu0 %v326_v6  ;;  %v452_v37 = vld [vmem:[#allocation5 + $0xa90] sm:$0xff]  ;;  %v187_v38 = vld [vmem:[#allocation5 + $0x248] sm:$0xff]  ;;  %v214_v40 = vld [vmem:[#allocation5 + $0x320] sm:$0xff] }
  0x3f   :  { %683 = vmatpush.msrb.mxu2 %v313_v0  ;;  %662 = vmatpush.msrb.mxu1 %v550_v7  ;;  %v411_v39 = vld [vmem:[#allocation5 + $0x948] sm:$0xff]  ;;  %v438_v41 = vld [vmem:[#allocation5 + $0xa20] sm:$0xff]  ;;  %v173_v42 = vld [vmem:[#allocation5 + $0x1d8] sm:$0xff] }
  0x40   :  { %703 = vmatpush.msrb.mxu3 %v537_v1  ;;  %643 = vmatpush.msrb.mxu0 %v312_v10  ;;  %v397_v43 = vld [vmem:[#allocation5 + $0x8d8] sm:$0xff]  ;;  %v200_v44 = vld [vmem:[#allocation5 + $0x2b0] sm:$0xff]  ;;  %v159_v46 = vld [vmem:[#allocation5 + $0x168] sm:$0xff] }
  0x41   :  { %684 = vmatpush.msrb.mxu2 %v299_v4  ;;  %663 = vmatpush.msrb.mxu1 %v536_v11  ;;  %v424_v45 = vld [vmem:[#allocation5 + $0x9b0] sm:$0xff]  ;;  %v383_v47 = vld [vmem:[#allocation5 + $0x868] sm:$0xff]  ;;  %v186_v48 = vld [vmem:[#allocation5 + $0x240] sm:$0xff] }
  0x42   :  { %704 = vmatpush.msrb.mxu3 %v523_v5  ;;  %644 = vmatpush.msrb.mxu0 %v298_v14  ;;  %v410_v49 = vld [vmem:[#allocation5 + $0x940] sm:$0xff]  ;;  %v145_v50 = vld [vmem:[#allocation5 + $0xf8] sm:$0xff]  ;;  %v172_v52 = vld [vmem:[#allocation5 + $0x1d0] sm:$0xff] }
  0x43   :  { %685 = vmatpush.msrb.mxu2 %v285_v8  ;;  %664 = vmatpush.msrb.mxu1 %v522_v15  ;;  %v369_v51 = vld [vmem:[#allocation5 + $0x7f8] sm:$0xff]  ;;  %v396_v53 = vld [vmem:[#allocation5 + $0x8d0] sm:$0xff]  ;;  %v131_v54 = vld [vmem:[#allocation5 + $0x88] sm:$0xff] }
  0x44   :  { %705 = vmatpush.msrb.mxu3 %v509_v9  ;;  %618 = vmatmul.f32.vlgmr.msra.gmra.mxu2 %v1608_v18  ;;  %v355_v55 = vld [vmem:[#allocation5 + $0x788] sm:$0xff]  ;;  %v158_v56 = vld [vmem:[#allocation5 + $0x160] sm:$0xff]  ;;  %v117_v58 = vld [vmem:[#allocation5 + $0x18] sm:$0xff] }
  0x45   :  { %686 = vmatpush.msrb.mxu2 %v271_v12  ;;  %638 = vmatmul.f32.vlgmr.msra.gmra.mxu3 %v1610_v19  ;;  %v382_v57 = vld [vmem:[#allocation5 + $0x860] sm:$0xff]  ;;  %v341_v59 = vld [vmem:[#allocation5 + $0x718] sm:$0xff]  ;;  %v144_v62 = vld [vmem:[#allocation5 + $0xf0] sm:$0xff] }
  0x46   :  { %706 = vmatpush.msrb.mxu3 %v495_v13  ;;  %645 = vmatpush.msrb.mxu0 %v284_v20  ;;  %v329_v60 = vld [vmem:[#allocation5 + $0x6b8] sm:$0xff]  ;;  %v368_v63 = vld [vmem:[#allocation5 + $0x7f0] sm:$0xff]  ;;  %v315_v0 = vld [vmem:[#allocation5 + $0x648] sm:$0xff] }
  0x47   :  { %687 = vmatpush.msrb.mxu2 %v257_v16  ;;  %665 = vmatpush.msrb.mxu1 %v508_v21  ;;  %v553_v61 = vld [vmem:[#allocation5 + $0xdb8] sm:$0xff]  ;;  %v539_v1 = vld [vmem:[#allocation5 + $0xd48] sm:$0xff]  ;;  %v130_v2 = vld [vmem:[#allocation5 + $0x80] sm:$0xff] }
  0x48   :  { %707 = vmatpush.msrb.mxu3 %v481_v17  ;;  %646 = vmatpush.msrb.mxu0 %v270_v24  ;;  %v354_v3 = vld [vmem:[#allocation5 + $0x780] sm:$0xff]  ;;  %v301_v4 = vld [vmem:[#allocation5 + $0x5d8] sm:$0xff]  ;;  %v116_v6 = vld [vmem:[#allocation5 + $0x10] sm:$0xff] }
  0x49   :  { %688 = vmatpush.msrb.mxu2 %v243_v22  ;;  %666 = vmatpush.msrb.mxu1 %v494_v25  ;;  %v525_v5 = vld [vmem:[#allocation5 + $0xcd8] sm:$0xff]  ;;  %v340_v7 = vld [vmem:[#allocation5 + $0x710] sm:$0xff]  ;;  %v287_v10 = vld [vmem:[#allocation5 + $0x568] sm:$0xff] }
  0x4a   :  { %708 = vmatpush.msrb.mxu3 %v467_v23  ;;  %647 = vmatpush.msrb.mxu0 %v256_v28  ;;  %v328_v8 = vld [vmem:[#allocation5 + $0x6b0] sm:$0xff]  ;;  %v511_v11 = vld [vmem:[#allocation5 + $0xc68] sm:$0xff]  ;;  %v314_v12 = vld [vmem:[#allocation5 + $0x640] sm:$0xff] }
  0x4b   :  { %689 = vmatpush.msrb.mxu2 %v229_v26  ;;  %667 = vmatpush.msrb.mxu1 %v480_v29  ;;  %v552_v9 = vld [vmem:[#allocation5 + $0xdb0] sm:$0xff]  ;;  %v538_v13 = vld [vmem:[#allocation5 + $0xd40] sm:$0xff]  ;;  %v273_v14 = vld [vmem:[#allocation5 + $0x4f8] sm:$0xff] }
  0x4c   :  { %709 = vmatpush.msrb.mxu3 %v453_v27  ;;  %578 = vmatmul.f32.vlgmr.msra.gmra.mxu0 %v1608_v18  ;;  %v497_v15 = vld [vmem:[#allocation5 + $0xbf8] sm:$0xff]  ;;  %v300_v16 = vld [vmem:[#allocation5 + $0x5d0] sm:$0xff]  ;;  %v259_v20 = vld [vmem:[#allocation5 + $0x488] sm:$0xff] }
  0x4d   :  { %690 = vmatpush.msrb.mxu2 %v215_v30  ;;  %598 = vmatmul.f32.vlgmr.msra.gmra.mxu1 %v1610_v19  ;;  %v524_v17 = vld [vmem:[#allocation5 + $0xcd0] sm:$0xff]  ;;  %v483_v21 = vld [vmem:[#allocation5 + $0xb88] sm:$0xff]  ;;  %v286_v22 = vld [vmem:[#allocation5 + $0x560] sm:$0xff] }
  0x4e   :  { %710 = vmatpush.msrb.mxu3 %v439_v31  ;;  %648 = vmatpush.msrb.mxu0 %v242_v32  ;;  %v510_v23 = vld [vmem:[#allocation5 + $0xc60] sm:$0xff]  ;;  %v245_v24 = vld [vmem:[#allocation5 + $0x418] sm:$0xff]  ;;  %v272_v26 = vld [vmem:[#allocation5 + $0x4f0] sm:$0xff] }
  0x4f   :  { %668 = vmatpush.msrb.mxu1 %v466_v33  ;;  %691 = vmatpush.msrb.mxu2 %v201_v34  ;;  %v469_v25 = vld [vmem:[#allocation5 + $0xb18] sm:$0xff]  ;;  %v496_v27 = vld [vmem:[#allocation5 + $0xbf0] sm:$0xff]  ;;  %v231_v28 = vld [vmem:[#allocation5 + $0x3a8] sm:$0xff] }
  0x50   :  { %711 = vmatpush.msrb.mxu3 %v425_v35  ;;  %649 = vmatpush.msrb.mxu0 %v228_v36  ;;  %v455_v29 = vld [vmem:[#allocation5 + $0xaa8] sm:$0xff]  ;;  %v258_v30 = vld [vmem:[#allocation5 + $0x480] sm:$0xff]  ;;  %v217_v32 = vld [vmem:[#allocation5 + $0x338] sm:$0xff] }
  0x51   :  { %669 = vmatpush.msrb.mxu1 %v452_v37  ;;  %692 = vmatpush.msrb.mxu2 %v187_v38  ;;  %v482_v31 = vld [vmem:[#allocation5 + $0xb80] sm:$0xff]  ;;  %v441_v33 = vld [vmem:[#allocation5 + $0xa38] sm:$0xff]  ;;  %v244_v34 = vld [vmem:[#allocation5 + $0x410] sm:$0xff] }
  0x52   :  { %712 = vmatpush.msrb.mxu3 %v411_v39  ;;  %650 = vmatpush.msrb.mxu0 %v214_v40  ;;  %v468_v35 = vld [vmem:[#allocation5 + $0xb10] sm:$0xff]  ;;  %v203_v36 = vld [vmem:[#allocation5 + $0x2c8] sm:$0xff]  ;;  %v230_v38 = vld [vmem:[#allocation5 + $0x3a0] sm:$0xff] }
  0x53   :  { %670 = vmatpush.msrb.mxu1 %v438_v41  ;;  %693 = vmatpush.msrb.mxu2 %v173_v42  ;;  %v427_v37 = vld [vmem:[#allocation5 + $0x9c8] sm:$0xff]  ;;  %v454_v39 = vld [vmem:[#allocation5 + $0xaa0] sm:$0xff]  ;;  %v189_v40 = vld [vmem:[#allocation5 + $0x258] sm:$0xff] }
  0x54   :  { %713 = vmatpush.msrb.mxu3 %v397_v43  ;;  %651 = vmatpush.msrb.mxu0 %v200_v44  ;;  %v413_v41 = vld [vmem:[#allocation5 + $0x958] sm:$0xff]  ;;  %v216_v42 = vld [vmem:[#allocation5 + $0x330] sm:$0xff]  ;;  %v175_v44 = vld [vmem:[#allocation5 + $0x1e8] sm:$0xff] }
  0x55   :  { %671 = vmatpush.msrb.mxu1 %v424_v45  ;;  %694 = vmatpush.msrb.mxu2 %v159_v46  ;;  %v440_v43 = vld [vmem:[#allocation5 + $0xa30] sm:$0xff]  ;;  %v399_v45 = vld [vmem:[#allocation5 + $0x8e8] sm:$0xff]  ;;  %v202_v46 = vld [vmem:[#allocation5 + $0x2c0] sm:$0xff] }
  0x56   :  { %714 = vmatpush.msrb.mxu3 %v383_v47  ;;  %652 = vmatpush.msrb.mxu0 %v186_v48  ;;  %v426_v47 = vld [vmem:[#allocation5 + $0x9c0] sm:$0xff]  ;;  %v161_v48 = vld [vmem:[#allocation5 + $0x178] sm:$0xff] }
  0x57   :  { %672 = vmatpush.msrb.mxu1 %v410_v49  ;;  %695 = vmatpush.msrb.mxu2 %v145_v50  ;;  %v385_v49 = vld [vmem:[#allocation5 + $0x878] sm:$0xff]  ;;  %v188_v50 = vld [vmem:[#allocation5 + $0x250] sm:$0xff] }
  0x58   :  { %715 = vmatpush.msrb.mxu3 %v369_v51  ;;  %653 = vmatpush.msrb.mxu0 %v172_v52  ;;  %v412_v51 = vld [vmem:[#allocation5 + $0x950] sm:$0xff]  ;;  %v147_v52 = vld [vmem:[#allocation5 + $0x108] sm:$0xff] }
  0x59   :  { %673 = vmatpush.msrb.mxu1 %v396_v53  ;;  %696 = vmatpush.msrb.mxu2 %v131_v54  ;;  %v371_v53 = vld [vmem:[#allocation5 + $0x808] sm:$0xff]  ;;  %v174_v54 = vld [vmem:[#allocation5 + $0x1e0] sm:$0xff] }
  0x5a   :  { %716 = vmatpush.msrb.mxu3 %v355_v55  ;;  %654 = vmatpush.msrb.mxu0 %v158_v56  ;;  %v398_v55 = vld [vmem:[#allocation5 + $0x8e0] sm:$0xff]  ;;  %v133_v56 = vld [vmem:[#allocation5 + $0x98] sm:$0xff] }
  0x5b   :  { %674 = vmatpush.msrb.mxu1 %v382_v57  ;;  %697 = vmatpush.msrb.mxu2 %v117_v58  ;;  %v357_v57 = vld [vmem:[#allocation5 + $0x798] sm:$0xff]  ;;  %v160_v58 = vld [vmem:[#allocation5 + $0x170] sm:$0xff] }
  0x5c   :  { %717 = vmatpush.msrb.mxu3 %v341_v59  ;;  %698 = vmatmul.f32.vlgmr.msrb.gmra.mxu2 %v1608_v18  ;;  %v384_v59 = vld [vmem:[#allocation5 + $0x870] sm:$0xff] }
  0x5d   :  { %718 = vmatmul.f32.vlgmr.msrb.gmra.mxu3 %v1610_v19  ;;  %762 = vmatpush.msra.mxu2 %v329_v60  ;;  %v119_v60 = vld [vmem:[#allocation5 + $0x28] sm:$0xff] }
  0x5e   :  { %782 = vmatpush.msra.mxu3 %v553_v61  ;;  %655 = vmatpush.msrb.mxu0 %v144_v62  ;;  %v343_v61 = vld [vmem:[#allocation5 + $0x728] sm:$0xff] }
  0x5f   :  { %675 = vmatpush.msrb.mxu1 %v368_v63  ;;  %763 = vmatpush.msra.mxu2 %v315_v0  ;;  %v331_v62 = vld [vmem:[#allocation5 + $0x6c8] sm:$0xff]  ;;  %v146_v0 = vld [vmem:[#allocation5 + $0x100] sm:$0xff] }
  0x60   :  { %783 = vmatpush.msra.mxu3 %v539_v1  ;;  %656 = vmatpush.msrb.mxu0 %v130_v2  ;;  %v555_v63 = vld [vmem:[#allocation5 + $0xdc8] sm:$0xff]  ;;  %v370_v1 = vld [vmem:[#allocation5 + $0x800] sm:$0xff]  ;;  %v317_v2 = vld [vmem:[#allocation5 + $0x658] sm:$0xff] }
  0x61   :  { %676 = vmatpush.msrb.mxu1 %v354_v3  ;;  %764 = vmatpush.msra.mxu2 %v301_v4  ;;  %v541_v3 = vld [vmem:[#allocation5 + $0xd58] sm:$0xff]  ;;  %v132_v4 = vld [vmem:[#allocation5 + $0x90] sm:$0xff] }
  0x62   :  { %784 = vmatpush.msra.mxu3 %v525_v5  ;;  %657 = vmatpush.msrb.mxu0 %v116_v6  ;;  %v356_v5 = vld [vmem:[#allocation5 + $0x790] sm:$0xff]  ;;  %v303_v6 = vld [vmem:[#allocation5 + $0x5e8] sm:$0xff] }
  0x63   :  { %677 = vmatpush.msrb.mxu1 %v340_v7  ;;  %658 = vmatmul.f32.vlgmr.msrb.gmra.mxu0 %v1608_v18  ;;  %v527_v7 = vld [vmem:[#allocation5 + $0xce8] sm:$0xff] }
  0x64   :  { %678 = vmatmul.f32.vlgmr.msrb.gmra.mxu1 %v1610_v19  ;;  %722 = vmatpush.msra.mxu0 %v328_v8  ;;  %v118_v8 = vld [vmem:[#allocation5 + $0x20] sm:$0xff] }
  0x65   :  { %742 = vmatpush.msra.mxu1 %v552_v9  ;;  %765 = vmatpush.msra.mxu2 %v287_v10  ;;  %v342_v9 = vld [vmem:[#allocation5 + $0x720] sm:$0xff] }
  0x66   :  { %785 = vmatpush.msra.mxu3 %v511_v11  ;;  %723 = vmatpush.msra.mxu0 %v314_v12  ;;  %v330_v10 = vld [vmem:[#allocation5 + $0x6c0] sm:$0xff]  ;;  %v289_v12 = vld [vmem:[#allocation5 + $0x578] sm:$0xff] }
  0x67   :  { %743 = vmatpush.msra.mxu1 %v538_v13  ;;  %766 = vmatpush.msra.mxu2 %v273_v14  ;;  %v554_v11 = vld [vmem:[#allocation5 + $0xdc0] sm:$0xff]  ;;  %v513_v13 = vld [vmem:[#allocation5 + $0xc78] sm:$0xff]  ;;  %v316_v14 = vld [vmem:[#allocation5 + $0x650] sm:$0xff] }
  0x68   :  { %786 = vmatpush.msra.mxu3 %v497_v15  ;;  %724 = vmatpush.msra.mxu0 %v300_v16  ;;  %v540_v15 = vld [vmem:[#allocation5 + $0xd50] sm:$0xff]  ;;  %v275_v16 = vld [vmem:[#allocation5 + $0x508] sm:$0xff] }
  0x69   :  { %744 = vmatpush.msra.mxu1 %v524_v17  ;;  %767 = vmatpush.msra.mxu2 %v259_v20  ;;  %v499_v17 = vld [vmem:[#allocation5 + $0xc08] sm:$0xff]  ;;  %v302_v20 = vld [vmem:[#allocation5 + $0x5e0] sm:$0xff] }
  0x6a   :  { %787 = vmatpush.msra.mxu3 %v483_v21  ;;  %725 = vmatpush.msra.mxu0 %v286_v22  ;;  %v526_v21 = vld [vmem:[#allocation5 + $0xce0] sm:$0xff]  ;;  %v261_v22 = vld [vmem:[#allocation5 + $0x498] sm:$0xff] }
  0x6b   :  { %745 = vmatpush.msra.mxu1 %v510_v23  ;;  %768 = vmatpush.msra.mxu2 %v245_v24  ;;  %v485_v23 = vld [vmem:[#allocation5 + $0xb98] sm:$0xff]  ;;  %v288_v24 = vld [vmem:[#allocation5 + $0x570] sm:$0xff] }
  0x6c   :  { %788 = vmatpush.msra.mxu3 %v469_v25  ;;  %726 = vmatpush.msra.mxu0 %v272_v26  ;;  %v512_v25 = vld [vmem:[#allocation5 + $0xc70] sm:$0xff]  ;;  %v247_v26 = vld [vmem:[#allocation5 + $0x428] sm:$0xff] }
  0x6d   :  { %746 = vmatpush.msra.mxu1 %v496_v27  ;;  %769 = vmatpush.msra.mxu2 %v231_v28  ;;  %v471_v27 = vld [vmem:[#allocation5 + $0xb28] sm:$0xff]  ;;  %v274_v28 = vld [vmem:[#allocation5 + $0x500] sm:$0xff] }
  0x6e   :  { %789 = vmatpush.msra.mxu3 %v455_v29  ;;  %727 = vmatpush.msra.mxu0 %v258_v30  ;;  %v498_v29 = vld [vmem:[#allocation5 + $0xc00] sm:$0xff]  ;;  %v233_v30 = vld [vmem:[#allocation5 + $0x3b8] sm:$0xff] }
  0x6f   :  { %747 = vmatpush.msra.mxu1 %v482_v31  ;;  %770 = vmatpush.msra.mxu2 %v217_v32  ;;  %v457_v31 = vld [vmem:[#allocation5 + $0xab8] sm:$0xff]  ;;  %v260_v32 = vld [vmem:[#allocation5 + $0x490] sm:$0xff] }
  0x70   :  { %790 = vmatpush.msra.mxu3 %v441_v33  ;;  %728 = vmatpush.msra.mxu0 %v244_v34  ;;  %v484_v33 = vld [vmem:[#allocation5 + $0xb90] sm:$0xff]  ;;  %v219_v34 = vld [vmem:[#allocation5 + $0x348] sm:$0xff] }
  0x71   :  { %748 = vmatpush.msra.mxu1 %v468_v35  ;;  %771 = vmatpush.msra.mxu2 %v203_v36  ;;  %v443_v35 = vld [vmem:[#allocation5 + $0xa48] sm:$0xff]  ;;  %v246_v36 = vld [vmem:[#allocation5 + $0x420] sm:$0xff] }
  0x72   :  { %791 = vmatpush.msra.mxu3 %v427_v37  ;;  %729 = vmatpush.msra.mxu0 %v230_v38  ;;  %v470_v37 = vld [vmem:[#allocation5 + $0xb20] sm:$0xff]  ;;  %v205_v38 = vld [vmem:[#allocation5 + $0x2d8] sm:$0xff] }
  0x73   :  { %749 = vmatpush.msra.mxu1 %v454_v39  ;;  %772 = vmatpush.msra.mxu2 %v189_v40  ;;  %v429_v39 = vld [vmem:[#allocation5 + $0x9d8] sm:$0xff]  ;;  %v232_v40 = vld [vmem:[#allocation5 + $0x3b0] sm:$0xff] }
  0x74   :  { %792 = vmatpush.msra.mxu3 %v413_v41  ;;  %730 = vmatpush.msra.mxu0 %v216_v42  ;;  %v456_v41 = vld [vmem:[#allocation5 + $0xab0] sm:$0xff]  ;;  %v191_v42 = vld [vmem:[#allocation5 + $0x268] sm:$0xff] }
  0x75   :  { %750 = vmatpush.msra.mxu1 %v440_v43  ;;  %773 = vmatpush.msra.mxu2 %v175_v44  ;;  %v415_v43 = vld [vmem:[#allocation5 + $0x968] sm:$0xff]  ;;  %v218_v44 = vld [vmem:[#allocation5 + $0x340] sm:$0xff] }
  0x76   :  { %793 = vmatpush.msra.mxu3 %v399_v45  ;;  %731 = vmatpush.msra.mxu0 %v202_v46  ;;  %v442_v45 = vld [vmem:[#allocation5 + $0xa40] sm:$0xff]  ;;  %v177_v46 = vld [vmem:[#allocation5 + $0x1f8] sm:$0xff] }
  0x77   :  { %751 = vmatpush.msra.mxu1 %v426_v47  ;;  %774 = vmatpush.msra.mxu2 %v161_v48  ;;  %v401_v47 = vld [vmem:[#allocation5 + $0x8f8] sm:$0xff]  ;;  %v204_v48 = vld [vmem:[#allocation5 + $0x2d0] sm:$0xff] }
  0x78   :  { %794 = vmatpush.msra.mxu3 %v385_v49  ;;  %732 = vmatpush.msra.mxu0 %v188_v50  ;;  %v428_v49 = vld [vmem:[#allocation5 + $0x9d0] sm:$0xff]  ;;  %v163_v50 = vld [vmem:[#allocation5 + $0x188] sm:$0xff] }
  0x79   :  { %752 = vmatpush.msra.mxu1 %v412_v51  ;;  %775 = vmatpush.msra.mxu2 %v147_v52  ;;  %v387_v51 = vld [vmem:[#allocation5 + $0x888] sm:$0xff]  ;;  %v190_v52 = vld [vmem:[#allocation5 + $0x260] sm:$0xff] }
  0x7a   :  { %795 = vmatpush.msra.mxu3 %v371_v53  ;;  %733 = vmatpush.msra.mxu0 %v174_v54  ;;  %v414_v53 = vld [vmem:[#allocation5 + $0x960] sm:$0xff]  ;;  %v149_v54 = vld [vmem:[#allocation5 + $0x118] sm:$0xff] }
  0x7b   :  { %753 = vmatpush.msra.mxu1 %v398_v55  ;;  %776 = vmatpush.msra.mxu2 %v133_v56  ;;  %v373_v55 = vld [vmem:[#allocation5 + $0x818] sm:$0xff]  ;;  %v176_v56 = vld [vmem:[#allocation5 + $0x1f0] sm:$0xff] }
  0x7c   :  { %796 = vmatpush.msra.mxu3 %v357_v57  ;;  %734 = vmatpush.msra.mxu0 %v160_v58  ;;  %v400_v57 = vld [vmem:[#allocation5 + $0x8f0] sm:$0xff]  ;;  %v135_v58 = vld [vmem:[#allocation5 + $0xa8] sm:$0xff] }
  0x7d   :  { %754 = vmatpush.msra.mxu1 %v384_v59  ;;  %777 = vmatpush.msra.mxu2 %v119_v60  ;;  %v359_v59 = vld [vmem:[#allocation5 + $0x7a8] sm:$0xff]  ;;  %v162_v60 = vld [vmem:[#allocation5 + $0x180] sm:$0xff] }
  0x7e   :  { %797 = vmatpush.msra.mxu3 %v343_v61  ;;  %778 = vmatmul.f32.vlgmr.msra.gmra.mxu2 %v1608_v18  ;;  %v386_v61 = vld [vmem:[#allocation5 + $0x880] sm:$0xff] }
  0x7f   :  { %798 = vmatmul.f32.vlgmr.msra.gmra.mxu3 %v1610_v19  ;;  %842 = vmatpush.msrb.mxu2 %v331_v62  ;;  %v121_v62 = vld [vmem:[#allocation5 + $0x38] sm:$0xff] }
  0x80   :  { %862 = vmatpush.msrb.mxu3 %v555_v63  ;;  %735 = vmatpush.msra.mxu0 %v146_v0  ;;  %v345_v63 = vld [vmem:[#allocation5 + $0x738] sm:$0xff] }
  0x81   :  { %755 = vmatpush.msra.mxu1 %v370_v1  ;;  %843 = vmatpush.msrb.mxu2 %v317_v2  ;;  %v333_v0 = vld [vmem:[#allocation5 + $0x6d8] sm:$0xff]  ;;  %v148_v2 = vld [vmem:[#allocation5 + $0x110] sm:$0xff] }
  0x82   :  { %863 = vmatpush.msrb.mxu3 %v541_v3  ;;  %736 = vmatpush.msra.mxu0 %v132_v4  ;;  %v557_v1 = vld [vmem:[#allocation5 + $0xdd8] sm:$0xff]  ;;  %v372_v3 = vld [vmem:[#allocation5 + $0x810] sm:$0xff]  ;;  %v319_v4 = vld [vmem:[#allocation5 + $0x668] sm:$0xff] }
  0x83   :  { %756 = vmatpush.msra.mxu1 %v356_v5  ;;  %844 = vmatpush.msrb.mxu2 %v303_v6  ;;  %v543_v5 = vld [vmem:[#allocation5 + $0xd68] sm:$0xff]  ;;  %v134_v6 = vld [vmem:[#allocation5 + $0xa0] sm:$0xff] }
  0x84   :  { %864 = vmatpush.msrb.mxu3 %v527_v7  ;;  %737 = vmatpush.msra.mxu0 %v118_v8  ;;  %v358_v7 = vld [vmem:[#allocation5 + $0x7a0] sm:$0xff]  ;;  %v305_v8 = vld [vmem:[#allocation5 + $0x5f8] sm:$0xff] }
  0x85   :  { %757 = vmatpush.msra.mxu1 %v342_v9  ;;  %738 = vmatmul.f32.vlgmr.msra.gmra.mxu0 %v1608_v18  ;;  %v529_v9 = vld [vmem:[#allocation5 + $0xcf8] sm:$0xff] }
  0x86   :  { %758 = vmatmul.f32.vlgmr.msra.gmra.mxu1 %v1610_v19  ;;  %802 = vmatpush.msrb.mxu0 %v330_v10  ;;  %v120_v10 = vld [vmem:[#allocation5 + $0x30] sm:$0xff] }
  0x87   :  { %822 = vmatpush.msrb.mxu1 %v554_v11  ;;  %845 = vmatpush.msrb.mxu2 %v289_v12  ;;  %v344_v11 = vld [vmem:[#allocation5 + $0x730] sm:$0xff] }
  0x88   :  { %865 = vmatpush.msrb.mxu3 %v513_v13  ;;  %803 = vmatpush.msrb.mxu0 %v316_v14  ;;  %v332_v12 = vld [vmem:[#allocation5 + $0x6d0] sm:$0xff]  ;;  %v291_v14 = vld [vmem:[#allocation5 + $0x588] sm:$0xff] }
  0x89   :  { %823 = vmatpush.msrb.mxu1 %v540_v15  ;;  %846 = vmatpush.msrb.mxu2 %v275_v16  ;;  %v556_v13 = vld [vmem:[#allocation5 + $0xdd0] sm:$0xff]  ;;  %v515_v15 = vld [vmem:[#allocation5 + $0xc88] sm:$0xff]  ;;  %v318_v16 = vld [vmem:[#allocation5 + $0x660] sm:$0xff] }
  0x8a   :  { %866 = vmatpush.msrb.mxu3 %v499_v17  ;;  %804 = vmatpush.msrb.mxu0 %v302_v20  ;;  %v542_v17 = vld [vmem:[#allocation5 + $0xd60] sm:$0xff]  ;;  %v277_v20 = vld [vmem:[#allocation5 + $0x518] sm:$0xff] }
  0x8b   :  { %824 = vmatpush.msrb.mxu1 %v526_v21  ;;  %847 = vmatpush.msrb.mxu2 %v261_v22  ;;  %v501_v21 = vld [vmem:[#allocation5 + $0xc18] sm:$0xff]  ;;  %v304_v22 = vld [vmem:[#allocation5 + $0x5f0] sm:$0xff] }
  0x8c   :  { %867 = vmatpush.msrb.mxu3 %v485_v23  ;;  %805 = vmatpush.msrb.mxu0 %v288_v24  ;;  %v528_v23 = vld [vmem:[#allocation5 + $0xcf0] sm:$0xff]  ;;  %v263_v24 = vld [vmem:[#allocation5 + $0x4a8] sm:$0xff] }
  0x8d   :  { %825 = vmatpush.msrb.mxu1 %v512_v25  ;;  %848 = vmatpush.msrb.mxu2 %v247_v26  ;;  %v487_v25 = vld [vmem:[#allocation5 + $0xba8] sm:$0xff]  ;;  %v290_v26 = vld [vmem:[#allocation5 + $0x580] sm:$0xff] }
  0x8e   :  { %868 = vmatpush.msrb.mxu3 %v471_v27  ;;  %806 = vmatpush.msrb.mxu0 %v274_v28  ;;  %v514_v27 = vld [vmem:[#allocation5 + $0xc80] sm:$0xff]  ;;  %v249_v28 = vld [vmem:[#allocation5 + $0x438] sm:$0xff] }
  0x8f   :  { %826 = vmatpush.msrb.mxu1 %v498_v29  ;;  %849 = vmatpush.msrb.mxu2 %v233_v30  ;;  %v473_v29 = vld [vmem:[#allocation5 + $0xb38] sm:$0xff]  ;;  %v276_v30 = vld [vmem:[#allocation5 + $0x510] sm:$0xff] }
  0x90   :  { %869 = vmatpush.msrb.mxu3 %v457_v31  ;;  %807 = vmatpush.msrb.mxu0 %v260_v32  ;;  %v500_v31 = vld [vmem:[#allocation5 + $0xc10] sm:$0xff]  ;;  %v235_v32 = vld [vmem:[#allocation5 + $0x3c8] sm:$0xff] }
  0x91   :  { %827 = vmatpush.msrb.mxu1 %v484_v33  ;;  %850 = vmatpush.msrb.mxu2 %v219_v34  ;;  %v459_v33 = vld [vmem:[#allocation5 + $0xac8] sm:$0xff]  ;;  %v262_v34 = vld [vmem:[#allocation5 + $0x4a0] sm:$0xff] }
  0x92   :  { %870 = vmatpush.msrb.mxu3 %v443_v35  ;;  %808 = vmatpush.msrb.mxu0 %v246_v36  ;;  %v486_v35 = vld [vmem:[#allocation5 + $0xba0] sm:$0xff]  ;;  %v221_v36 = vld [vmem:[#allocation5 + $0x358] sm:$0xff] }
  0x93   :  { %828 = vmatpush.msrb.mxu1 %v470_v37  ;;  %851 = vmatpush.msrb.mxu2 %v205_v38  ;;  %v445_v37 = vld [vmem:[#allocation5 + $0xa58] sm:$0xff]  ;;  %v248_v38 = vld [vmem:[#allocation5 + $0x430] sm:$0xff] }
  0x94   :  { %871 = vmatpush.msrb.mxu3 %v429_v39  ;;  %809 = vmatpush.msrb.mxu0 %v232_v40  ;;  %v472_v39 = vld [vmem:[#allocation5 + $0xb30] sm:$0xff]  ;;  %v207_v40 = vld [vmem:[#allocation5 + $0x2e8] sm:$0xff] }
  0x95   :  { %829 = vmatpush.msrb.mxu1 %v456_v41  ;;  %852 = vmatpush.msrb.mxu2 %v191_v42  ;;  %v431_v41 = vld [vmem:[#allocation5 + $0x9e8] sm:$0xff]  ;;  %v234_v42 = vld [vmem:[#allocation5 + $0x3c0] sm:$0xff] }
  0x96   :  { %872 = vmatpush.msrb.mxu3 %v415_v43  ;;  %810 = vmatpush.msrb.mxu0 %v218_v44  ;;  %v458_v43 = vld [vmem:[#allocation5 + $0xac0] sm:$0xff]  ;;  %v193_v44 = vld [vmem:[#allocation5 + $0x278] sm:$0xff] }
  0x97   :  { %830 = vmatpush.msrb.mxu1 %v442_v45  ;;  %853 = vmatpush.msrb.mxu2 %v177_v46  ;;  %v417_v45 = vld [vmem:[#allocation5 + $0x978] sm:$0xff]  ;;  %v220_v46 = vld [vmem:[#allocation5 + $0x350] sm:$0xff] }
  0x98   :  { %873 = vmatpush.msrb.mxu3 %v401_v47  ;;  %811 = vmatpush.msrb.mxu0 %v204_v48  ;;  %v444_v47 = vld [vmem:[#allocation5 + $0xa50] sm:$0xff]  ;;  %v179_v48 = vld [vmem:[#allocation5 + $0x208] sm:$0xff] }
  0x99   :  { %831 = vmatpush.msrb.mxu1 %v428_v49  ;;  %854 = vmatpush.msrb.mxu2 %v163_v50  ;;  %v403_v49 = vld [vmem:[#allocation5 + $0x908] sm:$0xff]  ;;  %v206_v50 = vld [vmem:[#allocation5 + $0x2e0] sm:$0xff] }
  0x9a   :  { %874 = vmatpush.msrb.mxu3 %v387_v51  ;;  %812 = vmatpush.msrb.mxu0 %v190_v52  ;;  %v430_v51 = vld [vmem:[#allocation5 + $0x9e0] sm:$0xff]  ;;  %v165_v52 = vld [vmem:[#allocation5 + $0x198] sm:$0xff] }
  0x9b   :  { %832 = vmatpush.msrb.mxu1 %v414_v53  ;;  %855 = vmatpush.msrb.mxu2 %v149_v54  ;;  %v389_v53 = vld [vmem:[#allocation5 + $0x898] sm:$0xff]  ;;  %v192_v54 = vld [vmem:[#allocation5 + $0x270] sm:$0xff] }
  0x9c   :  { %875 = vmatpush.msrb.mxu3 %v373_v55  ;;  %813 = vmatpush.msrb.mxu0 %v176_v56  ;;  %v416_v55 = vld [vmem:[#allocation5 + $0x970] sm:$0xff]  ;;  %v151_v56 = vld [vmem:[#allocation5 + $0x128] sm:$0xff] }
  0x9d   :  { %833 = vmatpush.msrb.mxu1 %v400_v57  ;;  %856 = vmatpush.msrb.mxu2 %v135_v58  ;;  %v375_v57 = vld [vmem:[#allocation5 + $0x828] sm:$0xff]  ;;  %v178_v58 = vld [vmem:[#allocation5 + $0x200] sm:$0xff] }
  0x9e   :  { %876 = vmatpush.msrb.mxu3 %v359_v59  ;;  %814 = vmatpush.msrb.mxu0 %v162_v60  ;;  %v402_v59 = vld [vmem:[#allocation5 + $0x900] sm:$0xff]  ;;  %v137_v60 = vld [vmem:[#allocation5 + $0xb8] sm:$0xff] }
  0x9f   :  { %834 = vmatpush.msrb.mxu1 %v386_v61  ;;  %857 = vmatpush.msrb.mxu2 %v121_v62  ;;  %v361_v61 = vld [vmem:[#allocation5 + $0x7b8] sm:$0xff]  ;;  %v164_v62 = vld [vmem:[#allocation5 + $0x190] sm:$0xff] }
  0xa0   :  { %877 = vmatpush.msrb.mxu3 %v345_v63  ;;  %858 = vmatmul.f32.vlgmr.msrb.gmra.mxu2 %v1608_v18  ;;  %v388_v63 = vld [vmem:[#allocation5 + $0x890] sm:$0xff] }
  0xa1   :  { %878 = vmatmul.f32.vlgmr.msrb.gmra.mxu3 %v1610_v19  ;;  %922 = vmatpush.msra.mxu2 %v333_v0  ;;  %v123_v0 = vld [vmem:[#allocation5 + $0x48] sm:$0xff] }
  0xa2   :  { %942 = vmatpush.msra.mxu3 %v557_v1  ;;  %815 = vmatpush.msrb.mxu0 %v148_v2  ;;  %v347_v1 = vld [vmem:[#allocation5 + $0x748] sm:$0xff] }
  0xa3   :  { %835 = vmatpush.msrb.mxu1 %v372_v3  ;;  %923 = vmatpush.msra.mxu2 %v319_v4  ;;  %v335_v2 = vld [vmem:[#allocation5 + $0x6e8] sm:$0xff]  ;;  %v150_v4 = vld [vmem:[#allocation5 + $0x120] sm:$0xff] }
  0xa4   :  { %943 = vmatpush.msra.mxu3 %v543_v5  ;;  %816 = vmatpush.msrb.mxu0 %v134_v6  ;;  %v559_v3 = vld [vmem:[#allocation5 + $0xde8] sm:$0xff]  ;;  %v374_v5 = vld [vmem:[#allocation5 + $0x820] sm:$0xff]  ;;  %v321_v6 = vld [vmem:[#allocation5 + $0x678] sm:$0xff] }
  0xa5   :  { %836 = vmatpush.msrb.mxu1 %v358_v7  ;;  %924 = vmatpush.msra.mxu2 %v305_v8  ;;  %v545_v7 = vld [vmem:[#allocation5 + $0xd78] sm:$0xff]  ;;  %v136_v8 = vld [vmem:[#allocation5 + $0xb0] sm:$0xff] }
  0xa6   :  { %944 = vmatpush.msra.mxu3 %v529_v9  ;;  %817 = vmatpush.msrb.mxu0 %v120_v10  ;;  %v360_v9 = vld [vmem:[#allocation5 + $0x7b0] sm:$0xff]  ;;  %v307_v10 = vld [vmem:[#allocation5 + $0x608] sm:$0xff] }
  0xa7   :  { %837 = vmatpush.msrb.mxu1 %v344_v11  ;;  %818 = vmatmul.f32.vlgmr.msrb.gmra.mxu0 %v1608_v18  ;;  %v531_v11 = vld [vmem:[#allocation5 + $0xd08] sm:$0xff] }
  0xa8   :  { %838 = vmatmul.f32.vlgmr.msrb.gmra.mxu1 %v1610_v19  ;;  %882 = vmatpush.msra.mxu0 %v332_v12  ;;  %v122_v12 = vld [vmem:[#allocation5 + $0x40] sm:$0xff] }
  0xa9   :  { %902 = vmatpush.msra.mxu1 %v556_v13  ;;  %925 = vmatpush.msra.mxu2 %v291_v14  ;;  %v346_v13 = vld [vmem:[#allocation5 + $0x740] sm:$0xff]  ;;  %v293_v14 = vld [vmem:[#allocation5 + $0x598] sm:$0xff] }
  0xaa   :  { %945 = vmatpush.msra.mxu3 %v515_v15  ;;  %883 = vmatpush.msra.mxu0 %v318_v16  ;;  %v517_v15 = vld [vmem:[#allocation5 + $0xc98] sm:$0xff]  ;;  %v1630_v16 = vld [vmem:[#allocation2] sm:$0xff] }
  0xab   :  { %903 = vmatpush.msra.mxu1 %v542_v17  ;;  %926 = vmatpush.msra.mxu2 %v277_v20  ;;  %v1633_v17 = vld [vmem:[#allocation2 + $0x8] sm:$0xff]  ;;  %v320_v20 = vld [vmem:[#allocation5 + $0x670] sm:$0xff] }
  0xac   :  { %946 = vmatpush.msra.mxu3 %v501_v21  ;;  %884 = vmatpush.msra.mxu0 %v304_v22  ;;  %v544_v21 = vld [vmem:[#allocation5 + $0xd70] sm:$0xff]  ;;  %v279_v22 = vld [vmem:[#allocation5 + $0x528] sm:$0xff] }
  0xad   :  { %904 = vmatpush.msra.mxu1 %v528_v23  ;;  %927 = vmatpush.msra.mxu2 %v263_v24  ;;  %v503_v23 = vld [vmem:[#allocation5 + $0xc28] sm:$0xff]  ;;  %v306_v24 = vld [vmem:[#allocation5 + $0x600] sm:$0xff] }
  0xae   :  { %947 = vmatpush.msra.mxu3 %v487_v25  ;;  %885 = vmatpush.msra.mxu0 %v290_v26  ;;  %v530_v25 = vld [vmem:[#allocation5 + $0xd00] sm:$0xff]  ;;  %v265_v26 = vld [vmem:[#allocation5 + $0x4b8] sm:$0xff] }
  0xaf   :  { %905 = vmatpush.msra.mxu1 %v514_v27  ;;  %928 = vmatpush.msra.mxu2 %v249_v28  ;;  %v489_v27 = vld [vmem:[#allocation5 + $0xbb8] sm:$0xff]  ;;  %v292_v28 = vld [vmem:[#allocation5 + $0x590] sm:$0xff] }
  0xb0   :  { %948 = vmatpush.msra.mxu3 %v473_v29  ;;  %886 = vmatpush.msra.mxu0 %v276_v30  ;;  %v516_v29 = vld [vmem:[#allocation5 + $0xc90] sm:$0xff]  ;;  %v251_v30 = vld [vmem:[#allocation5 + $0x448] sm:$0xff] }
  0xb1   :  { %906 = vmatpush.msra.mxu1 %v500_v31  ;;  %929 = vmatpush.msra.mxu2 %v235_v32  ;;  %v475_v31 = vld [vmem:[#allocation5 + $0xb48] sm:$0xff]  ;;  %v278_v32 = vld [vmem:[#allocation5 + $0x520] sm:$0xff] }
  0xb2   :  { %949 = vmatpush.msra.mxu3 %v459_v33  ;;  %887 = vmatpush.msra.mxu0 %v262_v34  ;;  %v502_v33 = vld [vmem:[#allocation5 + $0xc20] sm:$0xff]  ;;  %v237_v34 = vld [vmem:[#allocation5 + $0x3d8] sm:$0xff] }
  0xb3   :  { %907 = vmatpush.msra.mxu1 %v486_v35  ;;  %930 = vmatpush.msra.mxu2 %v221_v36  ;;  %v461_v35 = vld [vmem:[#allocation5 + $0xad8] sm:$0xff]  ;;  %v264_v36 = vld [vmem:[#allocation5 + $0x4b0] sm:$0xff] }
  0xb4   :  { %950 = vmatpush.msra.mxu3 %v445_v37  ;;  %888 = vmatpush.msra.mxu0 %v248_v38  ;;  %v488_v37 = vld [vmem:[#allocation5 + $0xbb0] sm:$0xff]  ;;  %v223_v38 = vld [vmem:[#allocation5 + $0x368] sm:$0xff] }
  0xb5   :  { %908 = vmatpush.msra.mxu1 %v472_v39  ;;  %931 = vmatpush.msra.mxu2 %v207_v40  ;;  %v447_v39 = vld [vmem:[#allocation5 + $0xa68] sm:$0xff]  ;;  %v250_v40 = vld [vmem:[#allocation5 + $0x440] sm:$0xff] }
  0xb6   :  { %951 = vmatpush.msra.mxu3 %v431_v41  ;;  %889 = vmatpush.msra.mxu0 %v234_v42  ;;  %v474_v41 = vld [vmem:[#allocation5 + $0xb40] sm:$0xff]  ;;  %v209_v42 = vld [vmem:[#allocation5 + $0x2f8] sm:$0xff] }
  0xb7   :  { %909 = vmatpush.msra.mxu1 %v458_v43  ;;  %932 = vmatpush.msra.mxu2 %v193_v44  ;;  %v433_v43 = vld [vmem:[#allocation5 + $0x9f8] sm:$0xff]  ;;  %v236_v44 = vld [vmem:[#allocation5 + $0x3d0] sm:$0xff] }
  0xb8   :  { %952 = vmatpush.msra.mxu3 %v417_v45  ;;  %890 = vmatpush.msra.mxu0 %v220_v46  ;;  %v460_v45 = vld [vmem:[#allocation5 + $0xad0] sm:$0xff]  ;;  %v195_v46 = vld [vmem:[#allocation5 + $0x288] sm:$0xff] }
  0xb9   :  { %910 = vmatpush.msra.mxu1 %v444_v47  ;;  %933 = vmatpush.msra.mxu2 %v179_v48  ;;  %v419_v47 = vld [vmem:[#allocation5 + $0x988] sm:$0xff]  ;;  %v222_v48 = vld [vmem:[#allocation5 + $0x360] sm:$0xff] }
  0xba   :  { %953 = vmatpush.msra.mxu3 %v403_v49  ;;  %891 = vmatpush.msra.mxu0 %v206_v50  ;;  %v446_v49 = vld [vmem:[#allocation5 + $0xa60] sm:$0xff]  ;;  %v181_v50 = vld [vmem:[#allocation5 + $0x218] sm:$0xff] }
  0xbb   :  { %911 = vmatpush.msra.mxu1 %v430_v51  ;;  %934 = vmatpush.msra.mxu2 %v165_v52  ;;  %v405_v51 = vld [vmem:[#allocation5 + $0x918] sm:$0xff]  ;;  %v208_v52 = vld [vmem:[#allocation5 + $0x2f0] sm:$0xff] }
  0xbc   :  { %954 = vmatpush.msra.mxu3 %v389_v53  ;;  %892 = vmatpush.msra.mxu0 %v192_v54  ;;  %v432_v53 = vld [vmem:[#allocation5 + $0x9f0] sm:$0xff]  ;;  %v167_v54 = vld [vmem:[#allocation5 + $0x1a8] sm:$0xff] }
  0xbd   :  { %912 = vmatpush.msra.mxu1 %v416_v55  ;;  %935 = vmatpush.msra.mxu2 %v151_v56  ;;  %v391_v55 = vld [vmem:[#allocation5 + $0x8a8] sm:$0xff]  ;;  %v194_v56 = vld [vmem:[#allocation5 + $0x280] sm:$0xff] }
  0xbe   :  { %955 = vmatpush.msra.mxu3 %v375_v57  ;;  %893 = vmatpush.msra.mxu0 %v178_v58  ;;  %v418_v57 = vld [vmem:[#allocation5 + $0x980] sm:$0xff]  ;;  %v153_v58 = vld [vmem:[#allocation5 + $0x138] sm:$0xff] }
  0xbf   :  { %913 = vmatpush.msra.mxu1 %v402_v59  ;;  %936 = vmatpush.msra.mxu2 %v137_v60  ;;  %v377_v59 = vld [vmem:[#allocation5 + $0x838] sm:$0xff]  ;;  %v180_v60 = vld [vmem:[#allocation5 + $0x210] sm:$0xff] }
  0xc0   :  { %956 = vmatpush.msra.mxu3 %v361_v61  ;;  %894 = vmatpush.msra.mxu0 %v164_v62  ;;  %v404_v61 = vld [vmem:[#allocation5 + $0x910] sm:$0xff]  ;;  %v139_v62 = vld [vmem:[#allocation5 + $0xc8] sm:$0xff] }
  0xc1   :  { %914 = vmatpush.msra.mxu1 %v388_v63  ;;  %937 = vmatpush.msra.mxu2 %v123_v0  ;;  %v363_v63 = vld [vmem:[#allocation5 + $0x7c8] sm:$0xff]  ;;  %v166_v0 = vld [vmem:[#allocation5 + $0x1a0] sm:$0xff] }
  0xc2   :  { %957 = vmatpush.msra.mxu3 %v347_v1  ;;  %938 = vmatmul.f32.vlgmr.msra.gmra.mxu2 %v1608_v18  ;;  %v334_v18 = vld [vmem:[#allocation5 + $0x6e0] sm:$0xff] }
  0xc3   :  { %958 = vmatmul.f32.vlgmr.msra.gmra.mxu3 %v1610_v19  ;;  %1002 = vmatpush.msrb.mxu2 %v335_v2  ;;  %v558_v19 = vld [vmem:[#allocation5 + $0xde0] sm:$0xff]  ;;  %v125_v2 = vld [vmem:[#allocation5 + $0x58] sm:$0xff] }
  0xc4   :  { %1022 = vmatpush.msrb.mxu3 %v559_v3  ;;  %895 = vmatpush.msra.mxu0 %v150_v4  ;;  %v390_v1 = vld [vmem:[#allocation5 + $0x8a0] sm:$0xff]  ;;  %v349_v3 = vld [vmem:[#allocation5 + $0x758] sm:$0xff] }
  0xc5   :  { %915 = vmatpush.msra.mxu1 %v374_v5  ;;  %1003 = vmatpush.msrb.mxu2 %v321_v6  ;;  %v337_v4 = vld [vmem:[#allocation5 + $0x6f8] sm:$0xff]  ;;  %v152_v6 = vld [vmem:[#allocation5 + $0x130] sm:$0xff] }
  0xc6   :  { %1023 = vmatpush.msrb.mxu3 %v545_v7  ;;  %896 = vmatpush.msra.mxu0 %v136_v8  ;;  %v561_v5 = vld [vmem:[#allocation5 + $0xdf8] sm:$0xff]  ;;  %v376_v7 = vld [vmem:[#allocation5 + $0x830] sm:$0xff]  ;;  %v323_v8 = vld [vmem:[#allocation5 + $0x688] sm:$0xff] }
  0xc7   :  { %916 = vmatpush.msra.mxu1 %v360_v9  ;;  %1004 = vmatpush.msrb.mxu2 %v307_v10  ;;  %v547_v9 = vld [vmem:[#allocation5 + $0xd88] sm:$0xff]  ;;  %v138_v10 = vld [vmem:[#allocation5 + $0xc0] sm:$0xff] }
  0xc8   :  { %1024 = vmatpush.msrb.mxu3 %v531_v11  ;;  %897 = vmatpush.msra.mxu0 %v122_v12  ;;  %v362_v11 = vld [vmem:[#allocation5 + $0x7c0] sm:$0xff]  ;;  %v309_v12 = vld [vmem:[#allocation5 + $0x618] sm:$0xff] }
  0xc9   :  { %917 = vmatpush.msra.mxu1 %v346_v13  ;;  %898 = vmatmul.f32.vlgmr.msra.gmra.mxu0 %v1630_v16  ;;  %v533_v13 = vld [vmem:[#allocation5 + $0xd18] sm:$0xff] }
  0xca   :  { %918 = vmatmul.f32.vlgmr.msra.gmra.mxu1 %v1633_v17  ;;  %962 = vmatpush.msrb.mxu0 %v334_v18  ;;  %v124_v18 = vld [vmem:[#allocation5 + $0x50] sm:$0xff] }
  0xcb   :  { %982 = vmatpush.msrb.mxu1 %v558_v19  ;;  %1005 = vmatpush.msrb.mxu2 %v293_v14  ;;  %v348_v19 = vld [vmem:[#allocation5 + $0x750] sm:$0xff] }
  0xcc   :  { %1025 = vmatpush.msrb.mxu3 %v517_v15  ;;  %963 = vmatpush.msrb.mxu0 %v320_v20  ;;  %v336_v14 = vld [vmem:[#allocation5 + $0x6f0] sm:$0xff]  ;;  %v295_v20 = vld [vmem:[#allocation5 + $0x5a8] sm:$0xff] }
  0xcd   :  { %983 = vmatpush.msrb.mxu1 %v544_v21  ;;  %1006 = vmatpush.msrb.mxu2 %v279_v22  ;;  %v560_v15 = vld [vmem:[#allocation5 + $0xdf0] sm:$0xff]  ;;  %v519_v21 = vld [vmem:[#allocation5 + $0xca8] sm:$0xff]  ;;  %v322_v22 = vld [vmem:[#allocation5 + $0x680] sm:$0xff] }
  0xce   :  { %1026 = vmatpush.msrb.mxu3 %v503_v23  ;;  %964 = vmatpush.msrb.mxu0 %v306_v24  ;;  %v546_v23 = vld [vmem:[#allocation5 + $0xd80] sm:$0xff]  ;;  %v281_v24 = vld [vmem:[#allocation5 + $0x538] sm:$0xff] }
  0xcf   :  { %984 = vmatpush.msrb.mxu1 %v530_v25  ;;  %1007 = vmatpush.msrb.mxu2 %v265_v26  ;;  %v505_v25 = vld [vmem:[#allocation5 + $0xc38] sm:$0xff]  ;;  %v308_v26 = vld [vmem:[#allocation5 + $0x610] sm:$0xff] }
  0xd0   :  { %1027 = vmatpush.msrb.mxu3 %v489_v27  ;;  %965 = vmatpush.msrb.mxu0 %v292_v28  ;;  %v532_v27 = vld [vmem:[#allocation5 + $0xd10] sm:$0xff]  ;;  %v267_v28 = vld [vmem:[#allocation5 + $0x4c8] sm:$0xff] }
  0xd1   :  { %985 = vmatpush.msrb.mxu1 %v516_v29  ;;  %1008 = vmatpush.msrb.mxu2 %v251_v30  ;;  %v491_v29 = vld [vmem:[#allocation5 + $0xbc8] sm:$0xff]  ;;  %v294_v30 = vld [vmem:[#allocation5 + $0x5a0] sm:$0xff] }
  0xd2   :  { %1028 = vmatpush.msrb.mxu3 %v475_v31  ;;  %966 = vmatpush.msrb.mxu0 %v278_v32  ;;  %v518_v31 = vld [vmem:[#allocation5 + $0xca0] sm:$0xff]  ;;  %v253_v32 = vld [vmem:[#allocation5 + $0x458] sm:$0xff] }
  0xd3   :  { %986 = vmatpush.msrb.mxu1 %v502_v33  ;;  %1009 = vmatpush.msrb.mxu2 %v237_v34  ;;  %v477_v33 = vld [vmem:[#allocation5 + $0xb58] sm:$0xff]  ;;  %v280_v34 = vld [vmem:[#allocation5 + $0x530] sm:$0xff] }
  0xd4   :  { %1029 = vmatpush.msrb.mxu3 %v461_v35  ;;  %967 = vmatpush.msrb.mxu0 %v264_v36  ;;  %v504_v35 = vld [vmem:[#allocation5 + $0xc30] sm:$0xff]  ;;  %v239_v36 = vld [vmem:[#allocation5 + $0x3e8] sm:$0xff] }
  0xd5   :  { %987 = vmatpush.msrb.mxu1 %v488_v37  ;;  %1010 = vmatpush.msrb.mxu2 %v223_v38  ;;  %v463_v37 = vld [vmem:[#allocation5 + $0xae8] sm:$0xff]  ;;  %v266_v38 = vld [vmem:[#allocation5 + $0x4c0] sm:$0xff] }
  0xd6   :  { %1030 = vmatpush.msrb.mxu3 %v447_v39  ;;  %968 = vmatpush.msrb.mxu0 %v250_v40  ;;  %v490_v39 = vld [vmem:[#allocation5 + $0xbc0] sm:$0xff]  ;;  %v225_v40 = vld [vmem:[#allocation5 + $0x378] sm:$0xff] }
  0xd7   :  { %988 = vmatpush.msrb.mxu1 %v474_v41  ;;  %1011 = vmatpush.msrb.mxu2 %v209_v42  ;;  %v449_v41 = vld [vmem:[#allocation5 + $0xa78] sm:$0xff]  ;;  %v252_v42 = vld [vmem:[#allocation5 + $0x450] sm:$0xff] }
  0xd8   :  { %1031 = vmatpush.msrb.mxu3 %v433_v43  ;;  %969 = vmatpush.msrb.mxu0 %v236_v44  ;;  %v476_v43 = vld [vmem:[#allocation5 + $0xb50] sm:$0xff]  ;;  %v211_v44 = vld [vmem:[#allocation5 + $0x308] sm:$0xff] }
  0xd9   :  { %989 = vmatpush.msrb.mxu1 %v460_v45  ;;  %1012 = vmatpush.msrb.mxu2 %v195_v46  ;;  %v435_v45 = vld [vmem:[#allocation5 + $0xa08] sm:$0xff]  ;;  %v238_v46 = vld [vmem:[#allocation5 + $0x3e0] sm:$0xff] }
  0xda   :  { %1032 = vmatpush.msrb.mxu3 %v419_v47  ;;  %970 = vmatpush.msrb.mxu0 %v222_v48  ;;  %v462_v47 = vld [vmem:[#allocation5 + $0xae0] sm:$0xff]  ;;  %v197_v48 = vld [vmem:[#allocation5 + $0x298] sm:$0xff] }
  0xdb   :  { %990 = vmatpush.msrb.mxu1 %v446_v49  ;;  %1013 = vmatpush.msrb.mxu2 %v181_v50  ;;  %v421_v49 = vld [vmem:[#allocation5 + $0x998] sm:$0xff]  ;;  %v224_v50 = vld [vmem:[#allocation5 + $0x370] sm:$0xff] }
  0xdc   :  { %1033 = vmatpush.msrb.mxu3 %v405_v51  ;;  %971 = vmatpush.msrb.mxu0 %v208_v52  ;;  %v448_v51 = vld [vmem:[#allocation5 + $0xa70] sm:$0xff]  ;;  %v183_v52 = vld [vmem:[#allocation5 + $0x228] sm:$0xff] }
  0xdd   :  { %991 = vmatpush.msrb.mxu1 %v432_v53  ;;  %1014 = vmatpush.msrb.mxu2 %v167_v54  ;;  %v407_v53 = vld [vmem:[#allocation5 + $0x928] sm:$0xff]  ;;  %v210_v54 = vld [vmem:[#allocation5 + $0x300] sm:$0xff] }
  0xde   :  { %1034 = vmatpush.msrb.mxu3 %v391_v55  ;;  %972 = vmatpush.msrb.mxu0 %v194_v56  ;;  %v434_v55 = vld [vmem:[#allocation5 + $0xa00] sm:$0xff]  ;;  %v169_v56 = vld [vmem:[#allocation5 + $0x1b8] sm:$0xff] }
  0xdf   :  { %992 = vmatpush.msrb.mxu1 %v418_v57  ;;  %1015 = vmatpush.msrb.mxu2 %v153_v58  ;;  %v393_v57 = vld [vmem:[#allocation5 + $0x8b8] sm:$0xff]  ;;  %v196_v58 = vld [vmem:[#allocation5 + $0x290] sm:$0xff] }
  0xe0   :  { %1035 = vmatpush.msrb.mxu3 %v377_v59  ;;  %973 = vmatpush.msrb.mxu0 %v180_v60  ;;  %v420_v59 = vld [vmem:[#allocation5 + $0x990] sm:$0xff]  ;;  %v155_v60 = vld [vmem:[#allocation5 + $0x148] sm:$0xff] }
  0xe1   :  { %993 = vmatpush.msrb.mxu1 %v404_v61  ;;  %1016 = vmatpush.msrb.mxu2 %v139_v62  ;;  %v379_v61 = vld [vmem:[#allocation5 + $0x848] sm:$0xff]  ;;  %v182_v62 = vld [vmem:[#allocation5 + $0x220] sm:$0xff] }
  0xe2   :  { %1036 = vmatpush.msrb.mxu3 %v363_v63  ;;  %974 = vmatpush.msrb.mxu0 %v166_v0  ;;  %v406_v63 = vld [vmem:[#allocation5 + $0x920] sm:$0xff]  ;;  %v141_v0 = vld [vmem:[#allocation5 + $0xd8] sm:$0xff] }
  0xe3   :  { %994 = vmatpush.msrb.mxu1 %v390_v1  ;;  %1017 = vmatpush.msrb.mxu2 %v125_v2  ;;  %v365_v1 = vld [vmem:[#allocation5 + $0x7d8] sm:$0xff]  ;;  %v168_v2 = vld [vmem:[#allocation5 + $0x1b0] sm:$0xff] }
  0xe4   :  { %1037 = vmatpush.msrb.mxu3 %v349_v3  ;;  %1018 = vmatmul.f32.vlgmr.msrb.gmra.mxu2 %v1630_v16  ;;  %v392_v3 = vld [vmem:[#allocation5 + $0x8b0] sm:$0xff] }
  0xe5   :  { %1038 = vmatmul.f32.vlgmr.msrb.gmra.mxu3 %v1633_v17  ;;  %1082 = vmatpush.msra.mxu2 %v337_v4  ;;  %v127_v4 = vld [vmem:[#allocation5 + $0x68] sm:$0xff] }
  0xe6   :  { %1102 = vmatpush.msra.mxu3 %v561_v5  ;;  %975 = vmatpush.msrb.mxu0 %v152_v6  ;;  %v351_v5 = vld [vmem:[#allocation5 + $0x768] sm:$0xff]  ;;  %v154_v6 = vld [vmem:[#allocation5 + $0x140] sm:$0xff] }
  0xe7   :  { %995 = vmatpush.msrb.mxu1 %v376_v7  ;;  %1083 = vmatpush.msra.mxu2 %v323_v8  ;;  %v378_v7 = vld [vmem:[#allocation5 + $0x840] sm:$0xff]  ;;  %v140_v8 = vld [vmem:[#allocation5 + $0xd0] sm:$0xff] }
  0xe8   :  { %1103 = vmatpush.msra.mxu3 %v547_v9  ;;  %976 = vmatpush.msrb.mxu0 %v138_v10  ;;  %v364_v9 = vld [vmem:[#allocation5 + $0x7d0] sm:$0xff]  ;;  %v126_v10 = vld [vmem:[#allocation5 + $0x60] sm:$0xff] }
  0xe9   :  { %996 = vmatpush.msrb.mxu1 %v362_v11  ;;  %1084 = vmatpush.msra.mxu2 %v309_v12  ;;  %v350_v11 = vld [vmem:[#allocation5 + $0x760] sm:$0xff]  ;;  %v619_v12 = vpop.f32.mrf.mxu2 }
  0xea   :  { %1104 = vmatpush.msra.mxu3 %v533_v13  ;;  %977 = vmatpush.msrb.mxu0 %v124_v18  ;;  %v639_v13 = vpop.f32.mrf.mxu3  ;;  %v579_v18 = vpop.f32.mrf.mxu0 }
  0xeb   :  { %997 = vmatpush.msrb.mxu1 %v348_v19  ;;  %978 = vmatmul.f32.vlgmr.msrb.gmra.mxu0 %v1630_v16  ;;  %v599_v19 = vpop.f32.mrf.mxu1 }
  0xec   :  { %998 = vmatmul.f32.vlgmr.msrb.gmra.mxu1 %v1633_v17  ;;  %1042 = vmatpush.msra.mxu0 %v336_v14 }
  0xed   :  { %1062 = vmatpush.msra.mxu1 %v560_v15  ;;  %1085 = vmatpush.msra.mxu2 %v295_v20 }
  0xee   :  { %1105 = vmatpush.msra.mxu3 %v519_v21  ;;  %1043 = vmatpush.msra.mxu0 %v322_v22  ;;  %v1249_v22 = vld [vmem:[#allocation7 + $0x78] sm:$0xff] }
  0xef   :  { %1063 = vmatpush.msra.mxu1 %v546_v23  ;;  %1086 = vmatpush.msra.mxu2 %v281_v24 }
  0xf0   :  { %1106 = vmatpush.msra.mxu3 %v505_v25  ;;  %1044 = vmatpush.msra.mxu0 %v308_v26 }
  0xf1   :  { %1064 = vmatpush.msra.mxu1 %v532_v27  ;;  %1087 = vmatpush.msra.mxu2 %v267_v28  ;;  %v699_v14 = vpop.f32.mrf.mxu2 }
  0xf2   :  { %1107 = vmatpush.msra.mxu3 %v491_v29  ;;  %1045 = vmatpush.msra.mxu0 %v294_v30  ;;  %v719_v15 = vpop.f32.mrf.mxu3  ;;  %v659_v20 = vpop.f32.mrf.mxu0 }
  0xf3   :  { %1065 = vmatpush.msra.mxu1 %v518_v31  ;;  %1088 = vmatpush.msra.mxu2 %v253_v32  ;;  %v679_v21 = vpop.f32.mrf.mxu1 }
  0xf4   :  { %1108 = vmatpush.msra.mxu3 %v477_v33  ;;  %1046 = vmatpush.msra.mxu0 %v280_v34  ;;  %v680_v33 = vadd.f32 %v679_v21, %v659_v20  ;;  %v720_v34 = vadd.f32 %v719_v15, %v699_v14  ;;  %v1237_v20 = vld [vmem:[#allocation7 + $0x18] sm:$0xff] }
  0xf5   :  { %1066 = vmatpush.msra.mxu1 %v504_v35  ;;  %1089 = vmatpush.msra.mxu2 %v239_v36  ;;  %v600_v35 = vadd.f32 %v599_v19, %v579_v18  ;;  %v640_v36 = vadd.f32 %v639_v13, %v619_v12  ;;  %v1239_v12 = vld [vmem:[#allocation7 + $0x28] sm:$0xff]  ;;  %v1238_v19 = vld [vmem:[#allocation7 + $0x20] sm:$0xff] }
  0xf6   :  { %1109 = vmatpush.msra.mxu3 %v463_v37  ;;  %1047 = vmatpush.msra.mxu0 %v266_v38  ;;  %v1248_v37 = vld [vmem:[#allocation7 + $0x70] sm:$0xff] }
  0xf7   :  { %1067 = vmatpush.msra.mxu1 %v490_v39  ;;  %1090 = vmatpush.msra.mxu2 %v225_v40  ;;  %v1138_v40 = vmul.f32 %v680_v33, %v680_v33 }
  0xf8   :  { %1110 = vmatpush.msra.mxu3 %v449_v41  ;;  %1048 = vmatpush.msra.mxu0 %v252_v42  ;;  %v1139_v41 = vmul.f32 %v720_v34, %v720_v34  ;;  %v1247_v42 = vld [vmem:[#allocation7 + $0x68] sm:$0xff] }
  0xf9   :  { %1068 = vmatpush.msra.mxu1 %v476_v43  ;;  %1091 = vmatpush.msra.mxu2 %v211_v44 }
  0xfa   :  { %1111 = vmatpush.msra.mxu3 %v435_v45  ;;  %1049 = vmatpush.msra.mxu0 %v238_v46 }
  0xfb   :  { %1069 = vmatpush.msra.mxu1 %v462_v47  ;;  %1092 = vmatpush.msra.mxu2 %v197_v48  ;;  %v1122_v47 = vmul.f32 %v600_v35, %v600_v35  ;;  %v1123_v48 = vmul.f32 %v640_v36, %v640_v36 }
  0xfc   :  { %1112 = vmatpush.msra.mxu3 %v421_v49  ;;  %1050 = vmatpush.msra.mxu0 %v224_v50 }
  0xfd   :  { %1070 = vmatpush.msra.mxu1 %v448_v51  ;;  %1093 = vmatpush.msra.mxu2 %v183_v52  ;;  %v1246_v51 = vld [vmem:[#allocation7 + $0x60] sm:$0xff] }
  0xfe   :  { %1113 = vmatpush.msra.mxu3 %v407_v53  ;;  %1051 = vmatpush.msra.mxu0 %v210_v54 }
  0xff   :  { %1071 = vmatpush.msra.mxu1 %v434_v55  ;;  %1094 = vmatpush.msra.mxu2 %v169_v56  ;;  %v1644_v56 = vadd.f32 %v1139_v41, %v1138_v40 }
 0x100   :  { %1114 = vmatpush.msra.mxu3 %v393_v57  ;;  %1052 = vmatpush.msra.mxu0 %v196_v58  ;;  %v1245_v57 = vld [vmem:[#allocation7 + $0x58] sm:$0xff] }
 0x101   :  { %1072 = vmatpush.msra.mxu1 %v420_v59  ;;  %1095 = vmatpush.msra.mxu2 %v155_v60  ;;  %v779_v23 = vpop.f32.mrf.mxu2  ;;  %1350 = vrsqrt.f32 %v1644_v56  ;;  %vm1148_vm0 = vcmp.eq.f32.partialorder %v1644_v56, inf  ;;  %vm1150_vm3 = vcmp.eq.f32.partialorder %v1644_v56, 0.0 }
 0x102   :  { %1115 = vmatpush.msra.mxu3 %v379_v61  ;;  %1053 = vmatpush.msra.mxu0 %v182_v62  ;;  %v799_v24 = vpop.f32.mrf.mxu3  ;;  %v739_v25 = vpop.f32.mrf.mxu0  ;;  %v1244_v62 = vld [vmem:[#allocation7 + $0x50] sm:$0xff] }
 0x103   :  { %1073 = vmatpush.msra.mxu1 %v406_v63  ;;  %1096 = vmatpush.msra.mxu2 %v141_v0  ;;  %v759_v26 = vpop.f32.mrf.mxu1  ;;  %v800_v39 = vadd.f32 %v799_v24, %v779_v23  ;;  %v1646_v63 = vadd.f32 %v1123_v48, %v1122_v47  ;;  %v1243_v0 = vld [vmem:[#allocation7 + $0x48] sm:$0xff]  ;;  %v1236_v24 = vld [vmem:[#allocation7 + $0x10] sm:$0xff] }
 0x104   :  { %1116 = vmatpush.msra.mxu3 %v365_v1  ;;  %1054 = vmatpush.msra.mxu0 %v168_v2  ;;  %v760_v38 = vadd.f32 %v759_v26, %v739_v25  ;;  %v1288_v48 = vld [vmem:[#allocation10 + $0x68] sm:$0xff] }
 0x105   :  { %1074 = vmatpush.msra.mxu1 %v392_v3  ;;  %1097 = vmatpush.msra.mxu2 %v127_v4  ;;  %v1155_v53 = vmul.f32 %v800_v39, %v800_v39  ;;  %v1242_v4 = vld [vmem:[#allocation7 + $0x40] sm:$0xff]  ;;  %1352 = vrsqrt.f32 %v1646_v63  ;;  %v1289_v39 = vld [vmem:[#allocation10 + $0x70] sm:$0xff]  ;;  %vm1132_vm1 = vcmp.eq.f32.partialorder %v1646_v63, inf  ;;  %vm1134_vm4 = vcmp.eq.f32.partialorder %v1646_v63, 0.0 }
 0x106   :  { %1117 = vmatpush.msra.mxu3 %v351_v5  ;;  %1098 = vmatmul.f32.vlgmr.msra.gmra.mxu2 %v1630_v16  ;;  %v1154_v52 = vmul.f32 %v760_v38, %v760_v38  ;;  %v1290_v38 = vld [vmem:[#allocation10 + $0x78] sm:$0xff] }
 0x107   :  { %1118 = vmatmul.f32.vlgmr.msra.gmra.mxu3 %v1633_v17  ;;  %1055 = vmatpush.msra.mxu0 %v154_v6  ;;  %v1351_v13 = vpop.eup %1350 }
 0x108   :  { %1075 = vmatpush.msra.mxu1 %v378_v7  ;;  %v1648_v1 = vadd.f32 %v1155_v53, %v1154_v52  ;;  %v1142_v15 = vmul.f32 %v1351_v13, %v1644_v56 }
 0x109   :  { %1056 = vmatpush.msra.mxu0 %v140_v8  ;;  %v1241_v8 = vld [vmem:[#allocation7 + $0x38] sm:$0xff] }
 0x10a   :  { %1076 = vmatpush.msra.mxu1 %v364_v9  ;;  %1354 = vrsqrt.f32 %v1648_v1  ;;  %v1143_v26 = vmul.f32 %v1351_v13, %v1142_v15  ;;  %vm1164_vm2 = vcmp.eq.f32.partialorder %v1648_v1, inf  ;;  %vm1166_vm6 = vcmp.eq.f32.partialorder %v1648_v1, 0.0 }
 0x10b   :  { %1057 = vmatpush.msra.mxu0 %v126_v10  ;;  %v1240_v10 = vld [vmem:[#allocation7 + $0x30] sm:$0xff]  ;;  %v1353_v18 = vpop.eup %1352 }
 0x10c   :  { %1077 = vmatpush.msra.mxu1 %v350_v11  ;;  %1058 = vmatmul.f32.vlgmr.msra.gmra.mxu0 %v1630_v16 }
 0x10d   :  { %1078 = vmatmul.f32.vlgmr.msra.gmra.mxu1 %v1633_v17  ;;  %1254 = vmatpush.msrb.mxu0 %v1249_v22  ;;  %v1126_v22 = vmul.f32 %v1353_v18, %v1646_v63 }
 0x10e   :  { %1295 = vmatpush.msrb.mxu1 %v1290_v38 }
 0x10f   :  { %1255 = vmatpush.msrb.mxu0 %v1248_v37 }
 0x110   :  { %v1355_v14 = vpop.eup %1354  ;;  %1296 = vmatpush.msrb.mxu1 %v1289_v39 }
 0x111   :  { %1256 = vmatpush.msrb.mxu0 %v1247_v42  ;;  %v1158_v23 = vmul.f32 %v1355_v14, %v1648_v1 }
 0x112   :  { %1297 = vmatpush.msrb.mxu1 %v1288_v48 }
 0x113   :  { %1257 = vmatpush.msrb.mxu0 %v1246_v51 }
 0x115   :  { %1258 = vmatpush.msrb.mxu0 %v1245_v57 }
 0x117   :  { %1259 = vmatpush.msrb.mxu0 %v1244_v62 }
 0x119   :  { %1260 = vmatpush.msrb.mxu0 %v1243_v0 }
 0x11b   :  { %1261 = vmatpush.msrb.mxu0 %v1242_v4 }
 0x11d   :  { %1262 = vmatpush.msrb.mxu0 %v1241_v8  ;;  %v1284_v8 = vld [vmem:[#allocation10 + $0x48] sm:$0xff] }
 0x11f   :  { %1263 = vmatpush.msrb.mxu0 %v1240_v10 }
 0x121   :  { %1264 = vmatpush.msrb.mxu0 %v1239_v12 }
 0x123   :  { %v859_v27 = vpop.f32.mrf.mxu2  ;;  %1265 = vmatpush.msrb.mxu0 %v1238_v19  ;;  %v1135_v19 = vand.u32 2147483648, %v1646_v63 }
 0x124   :  { %v879_v28 = vpop.f32.mrf.mxu3  ;;  %v819_v29 = vpop.f32.mrf.mxu0 }
 0x125   :  { %v839_v16 = vpop.f32.mrf.mxu1  ;;  %v880_v44 = vadd.f32 %v879_v28, %v859_v27  ;;  %1266 = vmatpush.msrb.mxu0 %v1237_v20  ;;  %v1235_v28 = vld [vmem:[#allocation7 + $0x8] sm:$0xff] }
 0x126   :  { %v840_v43 = vadd.f32 %v839_v16, %v819_v29  ;;  %v1127_v16 = vmul.f32 %v1353_v18, %v1126_v22  ;;  %v1282_v22 = vld [vmem:[#allocation10 + $0x38] sm:$0xff] }
 0x127   :  { %v1171_v59 = vmul.f32 %v880_v44, %v880_v44  ;;  %1267 = vmatpush.msrb.mxu0 %v1236_v24 }
 0x128   :  { %v1170_v58 = vmul.f32 %v840_v43, %v840_v43  ;;  %v1128_v35 = vmul.f32 0.5, %v1127_v16 }
 0x129   :  { %1268 = vmatpush.msrb.mxu0 %v1235_v28  ;;  %v1281_v28 = vld [vmem:[#allocation10 + $0x30] sm:$0xff] }
 0x12a   :  { %v1651_v5 = vadd.f32 %v1171_v59, %v1170_v58 }
 0x12c   :  { %1356 = vrsqrt.f32 %v1651_v5  ;;  %vm1180_vm5 = vcmp.eq.f32.partialorder %v1651_v5, inf  ;;  %v1183_v16 = vand.u32 2147483648, %v1651_v5  ;;  %vm1182_vm8 = vcmp.eq.f32.partialorder %v1651_v5, 0.0 }
 0x132   :  { %v1357_v21 = vpop.eup %1356 }
 0x133   :  { %v1174_v27 = vmul.f32 %v1357_v21, %v1651_v5 }
 0x135   :  { %v1175_v33 = vmul.f32 %v1357_v21, %v1174_v27 }
 0x145   :  { %v939_v30 = vpop.f32.mrf.mxu2 }
 0x146   :  { %v959_v17 = vpop.f32.mrf.mxu3  ;;  %v899_v31 = vpop.f32.mrf.mxu0 }
 0x147   :  { %v919_v32 = vpop.f32.mrf.mxu1  ;;  %v960_v55 = vadd.f32 %v959_v17, %v939_v30  ;;  %v1234_v30 = vld [vmem:[#allocation7] sm:$0xff]  ;;  %v1159_v17 = vmul.f32 %v1355_v14, %v1158_v23 }
 0x148   :  { %v920_v54 = vadd.f32 %v919_v32, %v899_v31  ;;  %v1144_v32 = vmul.f32 0.5, %v1143_v26  ;;  %1269 = vmatpush.msrb.mxu0 %v1234_v30 }
 0x149   :  { %v1187_v3 = vmul.f32 %v960_v55, %v960_v55  ;;  %v1160_v36 = vmul.f32 0.5, %v1159_v17 }
 0x14a   :  { %v1186_v2 = vmul.f32 %v920_v54, %v920_v54  ;;  %v1287_v54 = vld [vmem:[#allocation10 + $0x60] sm:$0xff] }
 0x14b   :  { %v1161_v52 = vsub.f32 1.5, %v1160_v36  ;;  %1298 = vmatpush.msrb.mxu1 %v1287_v54  ;;  %v1275_v54 = vld [vmem:[#allocation10] sm:$0xff] }
 0x14c   :  { %v1655_v9 = vadd.f32 %v1187_v3, %v1186_v2  ;;  %v1285_v3 = vld [vmem:[#allocation10 + $0x50] sm:$0xff] }
 0x14d   :  { %v1162_v0 = vmul.f32 %v1355_v14, %v1161_v52  ;;  %v1151_v14 = vand.u32 2147483648, %v1644_v56  ;;  %v1277_v52 = vld [vmem:[#allocation10 + $0x10] sm:$0xff] }
 0x14e   :  { %1358 = vrsqrt.f32 %v1655_v9  ;;  %vm1196_vm7 = vcmp.eq.f32.partialorder %v1655_v9, inf  ;;  %vm1198_vm10 = vcmp.eq.f32.partialorder %v1655_v9, 0.0 }
 0x14f   :  { %v1163_v12 = vmul.f32 %v1162_v0, %v1648_v1 }
 0x151   :  { %v1165_v26 = vsel %vm1164_vm2, %v1648_v1, %v1163_v12 }
 0x154   :  { %v1359_v25 = vpop.eup %1358 }
 0x155   :  { %v1190_v31 = vmul.f32 %v1359_v25, %v1655_v9 }
 0x157   :  { %v1191_v37 = vmul.f32 %v1359_v25, %v1190_v31 }
 0x159   :  { %v1192_v53 = vmul.f32 0.5, %v1191_v37 }
 0x15b   :  { %v1193_v2 = vsub.f32 1.5, %v1192_v53  ;;  %v1276_v53 = vld [vmem:[#allocation10 + $0x8] sm:$0xff] }
 0x167   :  { %v1019_v45 = vpop.f32.mrf.mxu2 }
 0x168   :  { %v1039_v46 = vpop.f32.mrf.mxu3  ;;  %v979_v49 = vpop.f32.mrf.mxu0 }
 0x169   :  { %v999_v50 = vpop.f32.mrf.mxu1  ;;  %v1040_v61 = vadd.f32 %v1039_v46, %v1019_v45  ;;  %v1145_v45 = vsub.f32 1.5, %v1144_v32  ;;  %v1176_v46 = vmul.f32 0.5, %v1175_v33  ;;  %v1280_v32 = vld [vmem:[#allocation10 + $0x28] sm:$0xff] }
 0x16a   :  { %v1000_v60 = vadd.f32 %v999_v50, %v979_v49  ;;  %v1129_v50 = vsub.f32 1.5, %v1128_v35 }
 0x16b   :  { %v1203_v7 = vmul.f32 %v1040_v61, %v1040_v61  ;;  %v1146_v57 = vmul.f32 %v1351_v13, %v1145_v45  ;;  %v1177_v58 = vsub.f32 1.5, %v1176_v46  ;;  %v1194_v13 = vmul.f32 %v1359_v25, %v1193_v2 }
 0x16c   :  { %v1202_v6 = vmul.f32 %v1000_v60, %v1000_v60  ;;  %v1286_v60 = vld [vmem:[#allocation10 + $0x58] sm:$0xff]  ;;  %v1130_v62 = vmul.f32 %v1353_v18, %v1129_v50  ;;  %v1283_v18 = vld [vmem:[#allocation10 + $0x40] sm:$0xff]  ;;  %v1167_v25 = vand.u32 2147483648, %v1648_v1 }
 0x16d   :  { %1299 = vmatpush.msrb.mxu1 %v1286_v60  ;;  %v1147_v4 = vmul.f32 %v1146_v57, %v1644_v56  ;;  %v1349_v60 = vld [vmem:[#allocation11] ss:$0 sm:$0xff] }
 0x16e   :  { %v1658_v11 = vadd.f32 %v1203_v7, %v1202_v6  ;;  %v1178_v6 = vmul.f32 %v1357_v21, %v1177_v58  ;;  %v1131_v10 = vmul.f32 %v1130_v62, %v1646_v63  ;;  %v1168_v33 = vsel %vm1166_vm6, %v1167_v25, %v1165_v26 }
 0x16f   :  { %1300 = vmatpush.msrb.mxu1 %v1285_v3  ;;  %v1149_v15 = vsel %vm1148_vm0, %v1644_v56, %v1147_v4  ;;  %v1195_v56 = vmul.f32 %v1194_v13, %v1655_v9 }
 0x170   :  { %1360 = vrsqrt.f32 %v1658_v11  ;;  %v1179_v20 = vmul.f32 %v1178_v6, %v1651_v5  ;;  %v1133_v24 = vsel %vm1132_vm1, %v1646_v63, %v1131_v10  ;;  %vm1212_vm9 = vcmp.eq.f32.partialorder %v1658_v11, inf }
 0x171   :  { %1301 = vmatpush.msrb.mxu1 %v1284_v8  ;;  %v1136_v1 = vsel %vm1134_vm4, %v1135_v19, %v1133_v24  ;;  %v1197_v36 = vsel %vm1196_vm7, %v1655_v9, %v1195_v56  ;;  %v1215_v39 = vand.u32 2147483648, %v1658_v11  ;;  %vm1214_vm11 = vcmp.eq.f32.partialorder %v1658_v11, 0.0 }
 0x172   :  { %v1181_v30 = vsel %vm1180_vm5, %v1651_v5, %v1179_v20  ;;  %v1279_v5 = vld [vmem:[#allocation10 + $0x20] sm:$0xff] }
 0x173   :  { %1302 = vmatpush.msrb.mxu1 %v1283_v18  ;;  %v1184_v38 = vsel %vm1182_vm8, %v1183_v16, %v1181_v30 }
 0x175   :  { %1303 = vmatpush.msrb.mxu1 %v1282_v22 }
 0x176   :  { %v1666_v29 = vpop.eup %1360 }
 0x177   :  { %v1206_v34 = vmul.f32 %v1666_v29, %v1658_v11  ;;  %1304 = vmatpush.msrb.mxu1 %v1281_v28 }
 0x179   :  { %v1207_v47 = vmul.f32 %v1666_v29, %v1206_v34  ;;  %v1199_v34 = vand.u32 2147483648, %v1655_v9  ;;  %1305 = vmatpush.msrb.mxu1 %v1280_v32 }
 0x17b   :  { %v1208_v59 = vmul.f32 0.5, %v1207_v47  ;;  %1306 = vmatpush.msrb.mxu1 %v1279_v5 }
 0x17d   :  { %v1209_v7 = vsub.f32 1.5, %v1208_v59 }
 0x17f   :  { %v1210_v21 = vmul.f32 %v1666_v29, %v1209_v7  ;;  %v1152_v29 = vsel %vm1150_vm3, %v1151_v14, %v1149_v15 }
 0x180   :  { %v1153_v35 = vadd.f32 %v1152_v29, %v1136_v1 }
 0x181   :  { %v1211_v17 = vmul.f32 %v1210_v21, %v1658_v11 }
 0x183   :  { %v1213_v63 = vsel %vm1212_vm9, %v1658_v11, %v1211_v17 }
 0x184   :  { %v1216_v46 = vsel %vm1214_vm11, %v1215_v39, %v1213_v63 }
 0x189   :  { %v1059_v40 = vpop.f32.mrf.mxu0  ;;  %v1099_v43 = vpop.f32.mrf.mxu2 }
 0x18a   :  { %v1079_v41 = vpop.f32.mrf.mxu1  ;;  %v1119_v44 = vpop.f32.mrf.mxu3 }
 0x18b   :  { %v1080_v42 = vadd.f32 %v1079_v41, %v1059_v40  ;;  %v1120_v49 = vadd.f32 %v1119_v44, %v1099_v43  ;;  %v1169_v40 = vadd.f32 %v1168_v33, %v1153_v35  ;;  %v1200_v43 = vsel %vm1198_vm10, %v1199_v34, %v1197_v36 }
 0x18d   :  { %v1218_v51 = vmul.f32 %v1080_v42, %v1080_v42  ;;  %v1219_v55 = vmul.f32 %v1120_v49, %v1120_v49  ;;  %v1278_v42 = vld [vmem:[#allocation10 + $0x18] sm:$0xff]  ;;  %v1185_v44 = vadd.f32 %v1184_v38, %v1169_v40 }
 0x18e   :  { %1307 = vmatpush.msrb.mxu1 %v1278_v42 }
 0x18f   :  { %v1672_v61 = vadd.f32 %v1219_v55, %v1218_v51  ;;  %v1201_v9 = vadd.f32 %v1200_v43, %v1185_v44  ;;  %v1348_v55 = vld [vmem:[#allocation8] ss:$0 sm:$0xff] }
 0x190   :  { %1308 = vmatpush.msrb.mxu1 %v1277_v52 }
 0x191   :  { %1362 = vrsqrt.f32 %v1672_v61  ;;  %vm1228_vm12 = vcmp.eq.f32.partialorder %v1672_v61, inf  ;;  %v1231_v48 = vand.u32 2147483648, %v1672_v61  ;;  %v1217_v49 = vadd.f32 %v1216_v46, %v1201_v9 }
 0x192   :  { %vm1230_vm13 = vcmp.eq.f32.partialorder %v1672_v61, 0.0  ;;  %1309 = vmatpush.msrb.mxu1 %v1276_v53 }
 0x194   :  { %1310 = vmatpush.msrb.mxu1 %v1275_v54 }
 0x197   :  { %v1363_v23 = vpop.eup %1362 }
 0x198   :  { %v1222_v27 = vmul.f32 %v1363_v23, %v1672_v61 }
 0x19a   :  { %v1223_v31 = vmul.f32 %v1363_v23, %v1222_v27 }
 0x19c   :  { %v1224_v37 = vmul.f32 0.5, %v1223_v31 }
 0x19e   :  { %v1225_v41 = vsub.f32 1.5, %v1224_v37 }
 0x1a0   :  { %v1226_v45 = vmul.f32 %v1363_v23, %v1225_v41 }
 0x1a2   :  { %v1227_v47 = vmul.f32 %v1226_v45, %v1672_v61 }
 0x1a4   :  { %v1229_v50 = vsel %vm1228_vm12, %v1672_v61, %v1227_v47 }
 0x1a5   :  { %v1232_v11 = vsel %vm1230_vm13, %v1231_v48, %v1229_v50 }
 0x1a6   :  { %v1233_v51 = vadd.f32 %v1232_v11, %v1217_v49 }
 0x1a8   :  { %1270 = vmatmul.f32.vlgmr.msrb.gmra.mxu0 %v1233_v51 }
 0x225   :  { %v1271_v57 = vpop.f32.mrf.mxu0 }
 0x226   :  { %v1272_v58 = vadd.f32 %v1348_v55, %v1271_v57 }
 0x228   :  { %v1274_v59 = vmax.f32 %v1272_v58, 0.0 }
 0x22a   :  { %1311 = vmatmul.f32.vlgmr.msrb.gmra.mxu1 %v1274_v59 }
 0x2a7   :  { %v1312_v62 = vpop.f32.mrf.mxu1 }
 0x2a8   :  { %v1313_v61 = vadd.f32 %v1349_v60, %v1312_v62 }
 0x2aa   :  { %v1315_v0 = vmax.f32 %v1313_v61, 0.0 }
 0x2ac   :  { %1316 = vst [vmem:[#allocation13] sm:$0xff] %v1315_v0 }
 0x2ad   :  { %1327 = dma.vmem_to_hbm [thread:$0]  %s1323_s5, 128, %s1325_s29, [#allocation4]  }
 0x2ae   :  { %1542 = dma.done.wait [#allocation4], 128  }
 0x2af   :  { %1543 = vsyncadd [#allocation4], 4294967168 }
 0x2b0   :  { %1332 = vsyncpa [#allocation3], 1 }
 0x2b1   :  { %1333 = vsyncpa [#allocation6], 1 }
 0x2b2   :  { %1334 = vsyncpa [#allocation9], 1 }
 0x2b3   :  { %1335 = vsyncpa [#allocation12], 1 }
 0x2b4   :  { %1336 = vsyncpa [#allocation4], 1 }

</bundles_post_ra>
